<compile_context>
chip_gen: v7x
topology: tpu7x:2x2x1
jax: 0.10.0
libtpu: 0.0.40
codegen_flags: <defaults>
</compile_context>

<pallas_src>
import math
import functools

import jax
import jax.numpy as jnp
from jax.experimental import pallas as pl
from jax.experimental.pallas import tpu as pltpu


_PARAM_ORDER = (
    "wq_t", "wk_t", "wv_t", "bq", "bk", "bv",
    "wo_t", "bo",
    "ln1_g", "ln1_b",
    "w1_t", "b1", "w2_t", "b2",
    "ln2_g", "ln2_b",
)
_MATMUL_WEIGHTS = frozenset({"wq_t", "wk_t", "wv_t", "wo_t", "w1_t", "w2_t"})


def transformer_block_kernel(
    x_ref,
    wq_ref, wk_ref, wv_ref, bq_ref, bk_ref, bv_ref,
    wo_ref, bo_ref,
    ln1g_ref, ln1b_ref,
    w1_ref, b1_ref, w2_ref, b2_ref,
    ln2g_ref, ln2b_ref,
    out_ref,
    k_scr, v_scr,
    *, num_heads: int, q_tile: int, approx_recip: bool,
):
    eps = 1e-5
    S, E = x_ref.shape
    TQ = q_tile
    dh = E // num_heads
    scale = 1.0 / math.sqrt(dh)
    cd = k_scr.dtype                      # compute dtype (matmul operands)
    qi = pl.program_id(1)

    # ---- K/V projections hoisted out of the per-query-tile loop: computed
    # once per batch element (qi == 0), stored head-split in persistent VMEM
    # scratch and reused by every query tile of this sequence.
    @pl.when(qi == 0)
    def _():
        xkv = x_ref[...].astype(cd)                                   # (S, E)
        k = jnp.dot(xkv, wk_ref[...],
                    preferred_element_type=jnp.float32) + bk_ref[...]
        v = jnp.dot(xkv, wv_ref[...],
                    preferred_element_type=jnp.float32) + bv_ref[...]
        k_cd = k.astype(cd)
        v_cd = v.astype(cd)
        for h in range(num_heads):        # static lane slices, once per batch
            lo = h * dh
            k_scr[h, :, :] = k_cd[:, lo:lo + dh]
            v_scr[h, :, :] = v_cd[:, lo:lo + dh]

    # ---- current query-row tile, sliced from the resident (S, E) block
    # (no separate x_q DMA stream).
    row0 = pl.multiple_of(qi * TQ, TQ)
    xq_f32 = x_ref[pl.ds(row0, TQ), :].astype(jnp.float32)            # (TQ, E)
    xq = xq_f32.astype(cd)

    # ---- Q projection for this tile: full K=E MXU contraction, f32 accum.
    q = jnp.dot(xq, wq_ref[...],
                preferred_element_type=jnp.float32) + bq_ref[...]
    q_cd = q.astype(cd)
    q3 = jnp.stack([q_cd[:, h * dh:(h + 1) * dh] for h in range(num_heads)],
                   axis=0)                                            # (H, TQ, dh)

    # ---- batched multi-head attention: single dot per stage with the head
    # axis as a leading batch dim (bounded temporaries, no Python unroll).
    # TODO(synk): flash-style online softmax over KV tiles for long S so the
    # (H, TQ, S) score temporary and the resident K/V scratch stay bounded.
    k3 = k_scr[...]                                                   # (H, S, dh)
    v3 = v_scr[...]
    s = jnp.einsum("hqd,hkd->hqk", q3, k3,
                   preferred_element_type=jnp.float32) * scale        # (H, TQ, S)
    s = s - jnp.max(s, axis=-1, keepdims=True)
    p = jnp.exp(s)
    denom = jnp.sum(p, axis=-1, keepdims=True)
    if approx_recip:
        p = p * pl.reciprocal(denom, approx=True)
    else:
        p = p / denom
    o = jnp.einsum("hqk,hkd->hqd", p.astype(cd), v3,
                   preferred_element_type=jnp.float32)                # (H, TQ, dh)

    # ---- reassemble heads lane-dense in registers; one fused K=E output
    # projection (no per-head K=dh matmuls, no masked scratch stores).
    o2 = jnp.concatenate([o[h] for h in range(num_heads)], axis=1)    # (TQ, E)
    attn = jnp.dot(o2.astype(cd), wo_ref[...],
                   preferred_element_type=jnp.float32) + bo_ref[...]

    def layer_norm(t, g, b):
        mu = jnp.mean(t, axis=-1, keepdims=True)
        var = jnp.mean((t - mu) * (t - mu), axis=-1, keepdims=True)
        return (t - mu) * jax.lax.rsqrt(var + eps) * g + b

    # ---- residual + LayerNorm 1 (stats in f32)
    y = layer_norm(xq_f32 + attn, ln1g_ref[...], ln1b_ref[...])

    # ---- feed-forward (Linear -> ReLU -> Linear)
    hdn = jnp.dot(y.astype(cd), w1_ref[...],
                  preferred_element_type=jnp.float32) + b1_ref[...]
    hdn = jnp.maximum(hdn, 0.0)
    f = jnp.dot(hdn.astype(cd), w2_ref[...],
                preferred_element_type=jnp.float32) + b2_ref[...]

    # ---- residual + LayerNorm 2
    z = layer_norm(y + f, ln2g_ref[...], ln2b_ref[...])
    out_ref[...] = z.astype(out_ref.dtype)


def _device_kind():
    try:
        return jax.devices()[0].device_kind.lower()
    except Exception:
        return ""


def _vmem_capacity_bytes():
    try:
        info = pltpu.get_tpu_info()
        cap = getattr(info, "vmem_capacity_bytes", None)
        if cap:
            return int(cap)
    except Exception:
        pass
    return 64 * 2**20            # conservative fallback (v7x per-TensorCore)


def _pick_q_tile(seq_len, device_kind):
    # v5e MXU is 4x128^2 -> 128-row tiles; v6e/v7x are 256-deep -> prefer 256.
    prefs = (128, 256) if "v5" in device_kind else (256, 128)
    for cand in prefs:
        if seq_len % cand == 0:
            return cand
    return seq_len


def transformer_block_pallas(x, params, num_heads, *,
                             compute_dtype=jnp.float32, q_tile=None):
    B, S, E = x.shape
    H_ff = params["w1_t"].shape[1]
    assert E % num_heads == 0, "embed_dim must divide num_heads"
    dh = E // num_heads
    kind = _device_kind()
    TQ = q_tile if q_tile is not None else _pick_q_tile(S, kind)
    assert S % TQ == 0
    n_q = S // TQ

    # Matmul weights go through the MXU in `compute_dtype` (bf16 halves their
    # HBM/VMEM footprint); biases and LayerNorm params stay f32.
    args = []
    for name in _PARAM_ORDER:
        a = params[name]
        if name in _MATMUL_WEIGHTS:
            a = a.astype(compute_dtype)
        args.append(a)

    # Single activation input stream (full sequence per batch element; block
    # index is qi-invariant so it is DMA'd once per b).  Grid-invariant
    # weights are resident whole in VMEM (no per-step DMA / double buffer).
    x_spec = pl.BlockSpec((pl.Squeezed(), S, E), lambda b, qi: (b, 0, 0))
    w_spec = pl.BlockSpec(memory_space=pltpu.MemorySpace.VMEM)
    out_spec = pl.BlockSpec((pl.Squeezed(), TQ, E), lambda b, qi: (b, qi, 0))

    # Generation-aware VMEM budget: resident weights + double-buffered
    # activation blocks + persistent K/V scratch + rough in-kernel
    # temporaries, capped at ~85% of this chip's physical VMEM.
    act_is = jnp.dtype(x.dtype).itemsize
    cd_is = jnp.dtype(compute_dtype).itemsize
    w_bytes = sum(int(a.size) * a.dtype.itemsize for a in args)
    blk_bytes = 2 * S * E * act_is + 2 * TQ * E * act_is
    scr_bytes = 2 * S * E * cd_is
    tmp_bytes = 4 * (2 * num_heads * TQ * S + 6 * TQ * E + 2 * S * E
                     + 2 * TQ * H_ff)
    needed = w_bytes + blk_bytes + scr_bytes + tmp_bytes
    cap = _vmem_capacity_bytes()
    vmem_limit = int(min(int(0.85 * cap), max(32 * 2**20, 2 * needed)))
    # TODO(synk): at production sizes where resident weights + (S,E) K/V no
    # longer fit (esp. v7x 64 MiB), fall back to pipelined weight BlockSpecs
    # (FFN tiled over H_ff as a reduction axis) and flash-style KV tiling.

    kernel = functools.partial(
        transformer_block_kernel, num_heads=num_heads, q_tile=TQ,
        approx_recip=(jnp.dtype(compute_dtype) == jnp.dtype(jnp.bfloat16)))

    return pl.pallas_call(
        kernel,
        out_shape=jax.ShapeDtypeStruct((B, S, E), x.dtype),
        grid=(B, n_q),
        in_specs=[x_spec] + [w_spec] * len(args),
        out_specs=out_spec,
        scratch_shapes=[pltpu.VMEM((num_heads, S, dh), compute_dtype),
                        pltpu.VMEM((num_heads, S, dh), compute_dtype)],
        compiler_params=pltpu.CompilerParams(
            # K/V live in scratch across query tiles -> qi is sequential
            # ("arbitrary"); B stays "parallel" for megacore sharding (v7x).
            dimension_semantics=("parallel", "arbitrary"),
            vmem_limit_bytes=vmem_limit),
    )(x, *args)


def transformer_encoder_pallas(x, layer_params, num_heads, *,
                               compute_dtype=jnp.float32):
    out_dtype = x.dtype
    if jnp.dtype(compute_dtype) != jnp.dtype(jnp.float32):
        # bf16 path: carry activations in bf16 across pallas_call boundaries
        # (halves the dominant HBM streams); stats stay f32 inside kernels.
        x = x.astype(compute_dtype)
    for params in layer_params:
        x = transformer_block_pallas(x, params, num_heads,
                                     compute_dtype=compute_dtype)
    return x.astype(out_dtype)


# ------------------------- pure-JAX reference -------------------------
def transformer_block_ref(x, p, num_heads):
    B, S, E = x.shape
    dh = E // num_heads
    scale = 1.0 / math.sqrt(dh)
    eps = 1e-5

    q = x @ p["wq_t"] + p["bq"]
    k = x @ p["wk_t"] + p["bk"]
    v = x @ p["wv_t"] + p["bv"]

    def split(t):
        return t.reshape(B, S, num_heads, dh).transpose(0, 2, 1, 3)

    qh, kh, vh = split(q), split(k), split(v)
    s = jnp.einsum("bhqd,bhkd->bhqk", qh, kh) * scale
    w = jax.nn.softmax(s, axis=-1)
    o = jnp.einsum("bhqk,bhkd->bhqd", w, vh)
    o = o.transpose(0, 2, 1, 3).reshape(B, S, E)
    attn = o @ p["wo_t"] + p["bo"]

    def ln(t, g, b):
        mu = jnp.mean(t, axis=-1, keepdims=True)
        var = jnp.mean((t - mu) ** 2, axis=-1, keepdims=True)
        return (t - mu) * jax.lax.rsqrt(var + eps) * g + b

    y = ln(x + attn, p["ln1_g"], p["ln1_b"])
    f = jnp.maximum(y @ p["w1_t"] + p["b1"], 0.0) @ p["w2_t"] + p["b2"]
    return ln(y + f, p["ln2_g"], p["ln2_b"])


def transformer_encoder_ref(x, layer_params, num_heads):
    for p in layer_params:
        x = transformer_block_ref(x, p, num_heads)
    return x


# ------------------------- parameter init -------------------------
def init_layer_params(key, embed_dim, ff_hidden_dim):
    E, H = embed_dim, ff_hidden_dim
    ks = jax.random.split(key, 6)
    std = 0.02

    def n(k, shape):
        return (std * jax.random.normal(k, shape)).astype(jnp.float32)

    return {
        # nn.MultiheadAttention in_proj split into q/k/v, stored transposed.
        "wq_t": n(ks[0], (E, E)), "wk_t": n(ks[1], (E, E)), "wv_t": n(ks[2], (E, E)),
        "bq": jnp.zeros((1, E), jnp.float32),
        "bk": jnp.zeros((1, E), jnp.float32),
        "bv": jnp.zeros((1, E), jnp.float32),
        "wo_t": n(ks[3], (E, E)),
        "bo": jnp.zeros((1, E), jnp.float32),
        "ln1_g": jnp.ones((1, E), jnp.float32),
        "ln1_b": jnp.zeros((1, E), jnp.float32),
        "w1_t": n(ks[4], (E, H)),
        "b1": jnp.zeros((1, H), jnp.float32),
        "w2_t": n(ks[5], (H, E)),
        "b2": jnp.zeros((1, E), jnp.float32),
        "ln2_g": jnp.ones((1, E), jnp.float32),
        "ln2_b": jnp.zeros((1, E), jnp.float32),
    }


if __name__ == "__main__":
    B, S, E = 2, 8, 32
    num_heads = 4
    ff_hidden_dim = 64
    num_layers = 2
    # TODO(synk): E/dh/H_ff here are far below 128 lanes; pad to 128-multiples
    # (with masked LayerNorm/softmax stats) before drawing perf conclusions.

    root = jax.random.PRNGKey(0)
    kx, kp = jax.random.split(root)
    x = jax.random.normal(kx, (B, S, E), dtype=jnp.float32)

    layer_keys = jax.random.split(kp, num_layers)
    layer_params = [init_layer_params(k, E, ff_hidden_dim) for k in layer_keys]

    ref = transformer_encoder_ref(x, layer_params, num_heads)

    # f32 compute path: exact softmax reciprocal -> tight tolerance.
    out_f32 = jax.block_until_ready(
        transformer_encoder_pallas(x, layer_params, num_heads,
                                   compute_dtype=jnp.float32))
    assert out_f32.shape == (B, S, E)
    assert jnp.allclose(out_f32, ref, atol=1e-3, rtol=1e-3), "f32 mismatch vs reference"

    # bf16 matmul operands + bf16 activation streams, f32 accumulation.
    out_bf16 = jax.block_until_ready(
        transformer_encoder_pallas(x, layer_params, num_heads,
                                   compute_dtype=jnp.bfloat16))
    assert out_bf16.shape == (B, S, E)
    assert jnp.allclose(out_bf16, ref, atol=5e-2, rtol=5e-2), "bf16 mismatch vs reference"

    print("KERNEL_OK")
</pallas_src>

<mosaic_0001>
module attributes {stable_mosaic.version = 11 : i64} {
  func.func @transformer_block_kernel(%arg0: i32, %arg1: i32, %arg2: memref<1x8x32xf32, #tpu.memory_space<vmem>>, %arg3: memref<32x32xf32, #tpu.memory_space<vmem>>, %arg4: memref<32x32xf32, #tpu.memory_space<vmem>>, %arg5: memref<32x32xf32, #tpu.memory_space<vmem>>, %arg6: memref<1x32xf32, #tpu.memory_space<vmem>>, %arg7: memref<1x32xf32, #tpu.memory_space<vmem>>, %arg8: memref<1x32xf32, #tpu.memory_space<vmem>>, %arg9: memref<32x32xf32, #tpu.memory_space<vmem>>, %arg10: memref<1x32xf32, #tpu.memory_space<vmem>>, %arg11: memref<1x32xf32, #tpu.memory_space<vmem>>, %arg12: memref<1x32xf32, #tpu.memory_space<vmem>>, %arg13: memref<32x64xf32, #tpu.memory_space<vmem>>, %arg14: memref<1x64xf32, #tpu.memory_space<vmem>>, %arg15: memref<64x32xf32, #tpu.memory_space<vmem>>, %arg16: memref<1x32xf32, #tpu.memory_space<vmem>>, %arg17: memref<1x32xf32, #tpu.memory_space<vmem>>, %arg18: memref<1x32xf32, #tpu.memory_space<vmem>>, %arg19: memref<1x8x32xf32, #tpu.memory_space<vmem>>, %arg20: memref<4x8x8xf32, #tpu.memory_space<vmem>>, %arg21: memref<4x8x8xf32, #tpu.memory_space<vmem>>) attributes {dimension_semantics = [#tpu.dimension_semantics<parallel>, #tpu.dimension_semantics<arbitrary>], iteration_bounds = array<i64: 2, 1>, scalar_prefetch = 0 : i64, scratch_operands = 2 : i64, tpu.core_type = #tpu.core_type<tc>, window_params = [{transform_indices = @transform_0, window_bounds = array<i64: 1, 8, 32>}, {pipeline_mode = #tpu.pipeline_mode<synchronous>, transform_indices = @transform_1, window_bounds = array<i64: 32, 32>}, {pipeline_mode = #tpu.pipeline_mode<synchronous>, transform_indices = @transform_2, window_bounds = array<i64: 32, 32>}, {pipeline_mode = #tpu.pipeline_mode<synchronous>, transform_indices = @transform_3, window_bounds = array<i64: 32, 32>}, {pipeline_mode = #tpu.pipeline_mode<synchronous>, transform_indices = @transform_4, window_bounds = array<i64: 1, 32>}, {pipeline_mode = #tpu.pipeline_mode<synchronous>, transform_indices = @transform_5, window_bounds = array<i64: 1, 32>}, {pipeline_mode = #tpu.pipeline_mode<synchronous>, transform_indices = @transform_6, window_bounds = array<i64: 1, 32>}, {pipeline_mode = #tpu.pipeline_mode<synchronous>, transform_indices = @transform_7, window_bounds = array<i64: 32, 32>}, {pipeline_mode = #tpu.pipeline_mode<synchronous>, transform_indices = @transform_8, window_bounds = array<i64: 1, 32>}, {pipeline_mode = #tpu.pipeline_mode<synchronous>, transform_indices = @transform_9, window_bounds = array<i64: 1, 32>}, {pipeline_mode = #tpu.pipeline_mode<synchronous>, transform_indices = @transform_10, window_bounds = array<i64: 1, 32>}, {pipeline_mode = #tpu.pipeline_mode<synchronous>, transform_indices = @transform_11, window_bounds = array<i64: 32, 64>}, {pipeline_mode = #tpu.pipeline_mode<synchronous>, transform_indices = @transform_12, window_bounds = array<i64: 1, 64>}, {pipeline_mode = #tpu.pipeline_mode<synchronous>, transform_indices = @transform_13, window_bounds = array<i64: 64, 32>}, {pipeline_mode = #tpu.pipeline_mode<synchronous>, transform_indices = @transform_14, window_bounds = array<i64: 1, 32>}, {pipeline_mode = #tpu.pipeline_mode<synchronous>, transform_indices = @transform_15, window_bounds = array<i64: 1, 32>}, {pipeline_mode = #tpu.pipeline_mode<synchronous>, transform_indices = @transform_16, window_bounds = array<i64: 1, 32>}, {transform_indices = @transform_17, window_bounds = array<i64: 1, 8, 32>}]} {
    %c0_i32 = arith.constant 0 : i32
    %0 = arith.cmpi eq, %arg1, %c0_i32 : i32
    %1 = arith.extui %0 : i1 to i32
    %c0_i32_0 = arith.constant 0 : i32
    %2 = arith.cmpi ne, %1, %c0_i32_0 : i32
    scf.if %2 {
      %c0_54 = arith.constant 0 : index
      %c0_55 = arith.constant 0 : index
      %c0_56 = arith.constant 0 : index
      %120 = vector.load %arg2[%c0_54, %c0_55, %c0_56] : memref<1x8x32xf32, #tpu.memory_space<vmem>>, vector<1x8x32xf32>
      %121 = vector.shape_cast %120 : vector<1x8x32xf32> to vector<8x32xf32>
      %c0_57 = arith.constant 0 : index
      %c0_58 = arith.constant 0 : index
      %122 = vector.load %arg4[%c0_57, %c0_58] : memref<32x32xf32, #tpu.memory_space<vmem>>, vector<32x32xf32>
      %cst_59 = arith.constant dense<0.000000e+00> : vector<8x32xf32>
      %123 = tpu.matmul %121, %122, %cst_59 {dimension_numbers = #tpu.dot_dimension_numbers<[1], [0], [0], [1], [0, 0, 1, 1], [], []>} : vector<8x32xf32>, vector<32x32xf32>, vector<8x32xf32> -> vector<8x32xf32>
      %c0_60 = arith.constant 0 : index
      %c0_61 = arith.constant 0 : index
      %124 = vector.load %arg7[%c0_60, %c0_61] : memref<1x32xf32, #tpu.memory_space<vmem>>, vector<1x32xf32>
      %125 = vector.broadcast %124 : vector<1x32xf32> to vector<8x32xf32>
      %126 = arith.addf %123, %125 : vector<8x32xf32>
      %c0_62 = arith.constant 0 : index
      %c0_63 = arith.constant 0 : index
      %127 = vector.load %arg5[%c0_62, %c0_63] : memref<32x32xf32, #tpu.memory_space<vmem>>, vector<32x32xf32>
      %cst_64 = arith.constant dense<0.000000e+00> : vector<8x32xf32>
      %128 = tpu.matmul %121, %127, %cst_64 {dimension_numbers = #tpu.dot_dimension_numbers<[1], [0], [0], [1], [0, 0, 1, 1], [], []>} : vector<8x32xf32>, vector<32x32xf32>, vector<8x32xf32> -> vector<8x32xf32>
      %c0_65 = arith.constant 0 : index
      %c0_66 = arith.constant 0 : index
      %129 = vector.load %arg8[%c0_65, %c0_66] : memref<1x32xf32, #tpu.memory_space<vmem>>, vector<1x32xf32>
      %130 = vector.broadcast %129 : vector<1x32xf32> to vector<8x32xf32>
      %131 = arith.addf %128, %130 : vector<8x32xf32>
      %132 = vector.extract_strided_slice %126 {offsets = [0, 0], sizes = [8, 8], strides = [1, 1]} : vector<8x32xf32> to vector<8x8xf32>
      %c0_67 = arith.constant 0 : index
      %c0_68 = arith.constant 0 : index
      %c0_69 = arith.constant 0 : index
      %133 = vector.load %arg20[%c0_67, %c0_68, %c0_69] : memref<4x8x8xf32, #tpu.memory_space<vmem>>, vector<1x8x8xf32>
      %134 = vector.shape_cast %133 : vector<1x8x8xf32> to vector<8x8xf32>
      %135 = vector.shape_cast %132 : vector<8x8xf32> to vector<1x8x8xf32>
      tpu.vector_store %arg20[%c0_67, %c0_68, %c0_69], %135 {strides = array<i32>} : memref<4x8x8xf32, #tpu.memory_space<vmem>>, vector<1x8x8xf32>,
      %136 = vector.extract_strided_slice %131 {offsets = [0, 0], sizes = [8, 8], strides = [1, 1]} : vector<8x32xf32> to vector<8x8xf32>
      %c0_70 = arith.constant 0 : index
      %c0_71 = arith.constant 0 : index
      %c0_72 = arith.constant 0 : index
      %137 = vector.load %arg21[%c0_70, %c0_71, %c0_72] : memref<4x8x8xf32, #tpu.memory_space<vmem>>, vector<1x8x8xf32>
      %138 = vector.shape_cast %137 : vector<1x8x8xf32> to vector<8x8xf32>
      %139 = vector.shape_cast %136 : vector<8x8xf32> to vector<1x8x8xf32>
      tpu.vector_store %arg21[%c0_70, %c0_71, %c0_72], %139 {strides = array<i32>} : memref<4x8x8xf32, #tpu.memory_space<vmem>>, vector<1x8x8xf32>,
      %140 = vector.extract_strided_slice %126 {offsets = [0, 8], sizes = [8, 8], strides = [1, 1]} : vector<8x32xf32> to vector<8x8xf32>
      %c1 = arith.constant 1 : index
      %c0_73 = arith.constant 0 : index
      %c0_74 = arith.constant 0 : index
      %141 = vector.load %arg20[%c1, %c0_73, %c0_74] : memref<4x8x8xf32, #tpu.memory_space<vmem>>, vector<1x8x8xf32>
      %142 = vector.shape_cast %141 : vector<1x8x8xf32> to vector<8x8xf32>
      %143 = vector.shape_cast %140 : vector<8x8xf32> to vector<1x8x8xf32>
      tpu.vector_store %arg20[%c1, %c0_73, %c0_74], %143 {strides = array<i32>} : memref<4x8x8xf32, #tpu.memory_space<vmem>>, vector<1x8x8xf32>,
      %144 = vector.extract_strided_slice %131 {offsets = [0, 8], sizes = [8, 8], strides = [1, 1]} : vector<8x32xf32> to vector<8x8xf32>
      %c1_75 = arith.constant 1 : index
      %c0_76 = arith.constant 0 : index
      %c0_77 = arith.constant 0 : index
      %145 = vector.load %arg21[%c1_75, %c0_76, %c0_77] : memref<4x8x8xf32, #tpu.memory_space<vmem>>, vector<1x8x8xf32>
      %146 = vector.shape_cast %145 : vector<1x8x8xf32> to vector<8x8xf32>
      %147 = vector.shape_cast %144 : vector<8x8xf32> to vector<1x8x8xf32>
      tpu.vector_store %arg21[%c1_75, %c0_76, %c0_77], %147 {strides = array<i32>} : memref<4x8x8xf32, #tpu.memory_space<vmem>>, vector<1x8x8xf32>,
      %148 = vector.extract_strided_slice %126 {offsets = [0, 16], sizes = [8, 8], strides = [1, 1]} : vector<8x32xf32> to vector<8x8xf32>
      %c2 = arith.constant 2 : index
      %c0_78 = arith.constant 0 : index
      %c0_79 = arith.constant 0 : index
      %149 = vector.load %arg20[%c2, %c0_78, %c0_79] : memref<4x8x8xf32, #tpu.memory_space<vmem>>, vector<1x8x8xf32>
      %150 = vector.shape_cast %149 : vector<1x8x8xf32> to vector<8x8xf32>
      %151 = vector.shape_cast %148 : vector<8x8xf32> to vector<1x8x8xf32>
      tpu.vector_store %arg20[%c2, %c0_78, %c0_79], %151 {strides = array<i32>} : memref<4x8x8xf32, #tpu.memory_space<vmem>>, vector<1x8x8xf32>,
      %152 = vector.extract_strided_slice %131 {offsets = [0, 16], sizes = [8, 8], strides = [1, 1]} : vector<8x32xf32> to vector<8x8xf32>
      %c2_80 = arith.constant 2 : index
      %c0_81 = arith.constant 0 : index
      %c0_82 = arith.constant 0 : index
      %153 = vector.load %arg21[%c2_80, %c0_81, %c0_82] : memref<4x8x8xf32, #tpu.memory_space<vmem>>, vector<1x8x8xf32>
      %154 = vector.shape_cast %153 : vector<1x8x8xf32> to vector<8x8xf32>
      %155 = vector.shape_cast %152 : vector<8x8xf32> to vector<1x8x8xf32>
      tpu.vector_store %arg21[%c2_80, %c0_81, %c0_82], %155 {strides = array<i32>} : memref<4x8x8xf32, #tpu.memory_space<vmem>>, vector<1x8x8xf32>,
      %156 = vector.extract_strided_slice %126 {offsets = [0, 24], sizes = [8, 8], strides = [1, 1]} : vector<8x32xf32> to vector<8x8xf32>
      %c3 = arith.constant 3 : index
      %c0_83 = arith.constant 0 : index
      %c0_84 = arith.constant 0 : index
      %157 = vector.load %arg20[%c3, %c0_83, %c0_84] : memref<4x8x8xf32, #tpu.memory_space<vmem>>, vector<1x8x8xf32>
      %158 = vector.shape_cast %157 : vector<1x8x8xf32> to vector<8x8xf32>
      %159 = vector.shape_cast %156 : vector<8x8xf32> to vector<1x8x8xf32>
      tpu.vector_store %arg20[%c3, %c0_83, %c0_84], %159 {strides = array<i32>} : memref<4x8x8xf32, #tpu.memory_space<vmem>>, vector<1x8x8xf32>,
      %160 = vector.extract_strided_slice %131 {offsets = [0, 24], sizes = [8, 8], strides = [1, 1]} : vector<8x32xf32> to vector<8x8xf32>
      %c3_85 = arith.constant 3 : index
      %c0_86 = arith.constant 0 : index
      %c0_87 = arith.constant 0 : index
      %161 = vector.load %arg21[%c3_85, %c0_86, %c0_87] : memref<4x8x8xf32, #tpu.memory_space<vmem>>, vector<1x8x8xf32>
      %162 = vector.shape_cast %161 : vector<1x8x8xf32> to vector<8x8xf32>
      %163 = vector.shape_cast %160 : vector<8x8xf32> to vector<1x8x8xf32>
      tpu.vector_store %arg21[%c3_85, %c0_86, %c0_87], %163 {strides = array<i32>} : memref<4x8x8xf32, #tpu.memory_space<vmem>>, vector<1x8x8xf32>,
    } else {
    }
    %c8_i32 = arith.constant 8 : i32
    %3 = arith.muli %arg1, %c8_i32 : i32
    %4 = tpu.assume_multiple %3, 8 : i32
    %c0 = arith.constant 0 : index
    %5 = arith.index_cast %4 : i32 to index
    %c0_1 = arith.constant 0 : index
    %6 = vector.load %arg2[%c0, %5, %c0_1] : memref<1x8x32xf32, #tpu.memory_space<vmem>>, vector<1x8x32xf32>
    %7 = vector.shape_cast %6 : vector<1x8x32xf32> to vector<8x32xf32>
    %c0_2 = arith.constant 0 : index
    %c0_3 = arith.constant 0 : index
    %8 = vector.load %arg3[%c0_2, %c0_3] : memref<32x32xf32, #tpu.memory_space<vmem>>, vector<32x32xf32>
    %cst = arith.constant dense<0.000000e+00> : vector<8x32xf32>
    %9 = tpu.matmul %7, %8, %cst {dimension_numbers = #tpu.dot_dimension_numbers<[1], [0], [0], [1], [0, 0, 1, 1], [], []>} : vector<8x32xf32>, vector<32x32xf32>, vector<8x32xf32> -> vector<8x32xf32>
    %c0_4 = arith.constant 0 : index
    %c0_5 = arith.constant 0 : index
    %10 = vector.load %arg6[%c0_4, %c0_5] : memref<1x32xf32, #tpu.memory_space<vmem>>, vector<1x32xf32>
    %11 = vector.broadcast %10 : vector<1x32xf32> to vector<8x32xf32>
    %12 = arith.addf %9, %11 : vector<8x32xf32>
    %13 = vector.extract_strided_slice %12 {offsets = [0, 0], sizes = [8, 8], strides = [1, 1]} : vector<8x32xf32> to vector<8x8xf32>
    %14 = vector.extract_strided_slice %12 {offsets = [0, 8], sizes = [8, 8], strides = [1, 1]} : vector<8x32xf32> to vector<8x8xf32>
    %15 = vector.extract_strided_slice %12 {offsets = [0, 16], sizes = [8, 8], strides = [1, 1]} : vector<8x32xf32> to vector<8x8xf32>
    %16 = vector.extract_strided_slice %12 {offsets = [0, 24], sizes = [8, 8], strides = [1, 1]} : vector<8x32xf32> to vector<8x8xf32>
    %17 = vector.shape_cast %13 : vector<8x8xf32> to vector<1x8x8xf32>
    %18 = vector.shape_cast %14 : vector<8x8xf32> to vector<1x8x8xf32>
    %19 = vector.shape_cast %15 : vector<8x8xf32> to vector<1x8x8xf32>
    %20 = vector.shape_cast %16 : vector<8x8xf32> to vector<1x8x8xf32>
    %21 = tpu.concatenate %17, %18, %19, %20 in 0 : vector<1x8x8xf32>, vector<1x8x8xf32>, vector<1x8x8xf32>, vector<1x8x8xf32> -> vector<4x8x8xf32>
    %c0_6 = arith.constant 0 : index
    %c0_7 = arith.constant 0 : index
    %c0_8 = arith.constant 0 : index
    %22 = vector.load %arg20[%c0_6, %c0_7, %c0_8] : memref<4x8x8xf32, #tpu.memory_space<vmem>>, vector<4x8x8xf32>
    %c0_9 = arith.constant 0 : index
    %c0_10 = arith.constant 0 : index
    %c0_11 = arith.constant 0 : index
    %23 = vector.load %arg21[%c0_9, %c0_10, %c0_11] : memref<4x8x8xf32, #tpu.memory_space<vmem>>, vector<4x8x8xf32>
    "tpu.trace_start"() <{level = 10 : i32, message = "hqd,hkd->hqk"}> : () -> ()
    %cst_12 = arith.constant dense<0.000000e+00> : vector<4x8x8xf32>
    %24 = tpu.matmul %21, %22, %cst_12 {dimension_numbers = #tpu.dot_dimension_numbers<[2], [2], [1], [1], [0, 0, 0, 1, 1, 1], [0], [0]>} : vector<4x8x8xf32>, vector<4x8x8xf32>, vector<4x8x8xf32> -> vector<4x8x8xf32>
    "tpu.trace_stop"() : () -> ()
    %cst_13 = arith.constant 0.353553385 : f32
    %25 = vector.broadcast %cst_13 : f32 to vector<4x8x8xf32>
    %26 = arith.mulf %24, %25 : vector<4x8x8xf32>
    %cst_14 = arith.constant dense<0xFF800000> : vector<4x8xf32>
    %27 = vector.multi_reduction <maximumf>, %26, %cst_14 [2] : vector<4x8x8xf32> to vector<4x8xf32>
    %28 = vector.shape_cast %27 : vector<4x8xf32> to vector<4x8x1xf32>
    %29 = vector.broadcast %28 : vector<4x8x1xf32> to vector<4x8x8xf32>
    %30 = arith.subf %26, %29 : vector<4x8x8xf32>
    %31 = math.exp %30 : vector<4x8x8xf32>
    %cst_15 = arith.constant dense<0.000000e+00> : vector<4x8xf32>
    %32 = vector.multi_reduction <add>, %31, %cst_15 [2] : vector<4x8x8xf32> to vector<4x8xf32>
    %33 = vector.shape_cast %32 : vector<4x8xf32> to vector<4x8x1xf32>
    %34 = vector.broadcast %33 : vector<4x8x1xf32> to vector<4x8x8xf32>
    %35 = arith.divf %31, %34 : vector<4x8x8xf32>
    "tpu.trace_start"() <{level = 10 : i32, message = "hqk,hkd->hqd"}> : () -> ()
    %cst_16 = arith.constant dense<0.000000e+00> : vector<4x8x8xf32>
    %36 = tpu.matmul %35, %23, %cst_16 {dimension_numbers = #tpu.dot_dimension_numbers<[2], [1], [1], [2], [0, 0, 0, 1, 1, 2], [0], [0]>} : vector<4x8x8xf32>, vector<4x8x8xf32>, vector<4x8x8xf32> -> vector<4x8x8xf32>
    "tpu.trace_stop"() : () -> ()
    %37 = vector.extract_strided_slice %36 {offsets = [0, 0, 0], sizes = [1, 8, 8], strides = [1, 1, 1]} : vector<4x8x8xf32> to vector<1x8x8xf32>
    %38 = vector.shape_cast %37 : vector<1x8x8xf32> to vector<8x8xf32>
    %39 = vector.extract_strided_slice %36 {offsets = [1, 0, 0], sizes = [1, 8, 8], strides = [1, 1, 1]} : vector<4x8x8xf32> to vector<1x8x8xf32>
    %40 = vector.shape_cast %39 : vector<1x8x8xf32> to vector<8x8xf32>
    %41 = vector.extract_strided_slice %36 {offsets = [2, 0, 0], sizes = [1, 8, 8], strides = [1, 1, 1]} : vector<4x8x8xf32> to vector<1x8x8xf32>
    %42 = vector.shape_cast %41 : vector<1x8x8xf32> to vector<8x8xf32>
    %43 = vector.extract_strided_slice %36 {offsets = [3, 0, 0], sizes = [1, 8, 8], strides = [1, 1, 1]} : vector<4x8x8xf32> to vector<1x8x8xf32>
    %44 = vector.shape_cast %43 : vector<1x8x8xf32> to vector<8x8xf32>
    %45 = tpu.concatenate %38, %40, %42, %44 in 1 : vector<8x8xf32>, vector<8x8xf32>, vector<8x8xf32>, vector<8x8xf32> -> vector<8x32xf32>
    %c0_17 = arith.constant 0 : index
    %c0_18 = arith.constant 0 : index
    %46 = vector.load %arg9[%c0_17, %c0_18] : memref<32x32xf32, #tpu.memory_space<vmem>>, vector<32x32xf32>
    %cst_19 = arith.constant dense<0.000000e+00> : vector<8x32xf32>
    %47 = tpu.matmul %45, %46, %cst_19 {dimension_numbers = #tpu.dot_dimension_numbers<[1], [0], [0], [1], [0, 0, 1, 1], [], []>} : vector<8x32xf32>, vector<32x32xf32>, vector<8x32xf32> -> vector<8x32xf32>
    %c0_20 = arith.constant 0 : index
    %c0_21 = arith.constant 0 : index
    %48 = vector.load %arg10[%c0_20, %c0_21] : memref<1x32xf32, #tpu.memory_space<vmem>>, vector<1x32xf32>
    %49 = vector.broadcast %48 : vector<1x32xf32> to vector<8x32xf32>
    %50 = arith.addf %47, %49 : vector<8x32xf32>
    %51 = arith.addf %7, %50 : vector<8x32xf32>
    %c0_22 = arith.constant 0 : index
    %c0_23 = arith.constant 0 : index
    %52 = vector.load %arg11[%c0_22, %c0_23] : memref<1x32xf32, #tpu.memory_space<vmem>>, vector<1x32xf32>
    %c0_24 = arith.constant 0 : index
    %c0_25 = arith.constant 0 : index
    %53 = vector.load %arg12[%c0_24, %c0_25] : memref<1x32xf32, #tpu.memory_space<vmem>>, vector<1x32xf32>
    %cst_26 = arith.constant dense<0.000000e+00> : vector<8xf32>
    %54 = vector.multi_reduction <add>, %51, %cst_26 [1] : vector<8x32xf32> to vector<8xf32>
    %55 = vector.shape_cast %54 : vector<8xf32> to vector<8x1xf32>
    %cst_27 = arith.constant 3.200000e+01 : f32
    %56 = vector.broadcast %cst_27 : f32 to vector<8x1xf32>
    %57 = arith.divf %55, %56 : vector<8x1xf32>
    %58 = vector.broadcast %57 : vector<8x1xf32> to vector<8x32xf32>
    %59 = arith.subf %51, %58 : vector<8x32xf32>
    %60 = vector.broadcast %57 : vector<8x1xf32> to vector<8x32xf32>
    %61 = arith.subf %51, %60 : vector<8x32xf32>
    %62 = arith.mulf %59, %61 : vector<8x32xf32>
    %cst_28 = arith.constant dense<0.000000e+00> : vector<8xf32>
    %63 = vector.multi_reduction <add>, %62, %cst_28 [1] : vector<8x32xf32> to vector<8xf32>
    %64 = vector.shape_cast %63 : vector<8xf32> to vector<8x1xf32>
    %cst_29 = arith.constant 3.200000e+01 : f32
    %65 = vector.broadcast %cst_29 : f32 to vector<8x1xf32>
    %66 = arith.divf %64, %65 : vector<8x1xf32>
    %67 = vector.broadcast %57 : vector<8x1xf32> to vector<8x32xf32>
    %68 = arith.subf %51, %67 : vector<8x32xf32>
    %cst_30 = arith.constant 9.99999974E-6 : f32
    %69 = vector.broadcast %cst_30 : f32 to vector<8x1xf32>
    %70 = arith.addf %66, %69 : vector<8x1xf32>
    %71 = math.rsqrt %70 : vector<8x1xf32>
    %72 = vector.broadcast %71 : vector<8x1xf32> to vector<8x32xf32>
    %73 = arith.mulf %68, %72 : vector<8x32xf32>
    %74 = vector.broadcast %52 : vector<1x32xf32> to vector<8x32xf32>
    %75 = arith.mulf %73, %74 : vector<8x32xf32>
    %76 = vector.broadcast %53 : vector<1x32xf32> to vector<8x32xf32>
    %77 = arith.addf %75, %76 : vector<8x32xf32>
    %c0_31 = arith.constant 0 : index
    %c0_32 = arith.constant 0 : index
    %78 = vector.load %arg13[%c0_31, %c0_32] : memref<32x64xf32, #tpu.memory_space<vmem>>, vector<32x64xf32>
    %cst_33 = arith.constant dense<0.000000e+00> : vector<8x64xf32>
    %79 = tpu.matmul %77, %78, %cst_33 {dimension_numbers = #tpu.dot_dimension_numbers<[1], [0], [0], [1], [0, 0, 1, 1], [], []>} : vector<8x32xf32>, vector<32x64xf32>, vector<8x64xf32> -> vector<8x64xf32>
    %c0_34 = arith.constant 0 : index
    %c0_35 = arith.constant 0 : index
    %80 = vector.load %arg14[%c0_34, %c0_35] : memref<1x64xf32, #tpu.memory_space<vmem>>, vector<1x64xf32>
    %81 = vector.broadcast %80 : vector<1x64xf32> to vector<8x64xf32>
    %82 = arith.addf %79, %81 : vector<8x64xf32>
    %cst_36 = arith.constant 0.000000e+00 : f32
    %83 = vector.broadcast %cst_36 : f32 to vector<8x64xf32>
    %84 = arith.maximumf %82, %83 : vector<8x64xf32>
    %c0_37 = arith.constant 0 : index
    %c0_38 = arith.constant 0 : index
    %85 = vector.load %arg15[%c0_37, %c0_38] : memref<64x32xf32, #tpu.memory_space<vmem>>, vector<64x32xf32>
    %cst_39 = arith.constant dense<0.000000e+00> : vector<8x32xf32>
    %86 = tpu.matmul %84, %85, %cst_39 {dimension_numbers = #tpu.dot_dimension_numbers<[1], [0], [0], [1], [0, 0, 1, 1], [], []>} : vector<8x64xf32>, vector<64x32xf32>, vector<8x32xf32> -> vector<8x32xf32>
    %c0_40 = arith.constant 0 : index
    %c0_41 = arith.constant 0 : index
    %87 = vector.load %arg16[%c0_40, %c0_41] : memref<1x32xf32, #tpu.memory_space<vmem>>, vector<1x32xf32>
    %88 = vector.broadcast %87 : vector<1x32xf32> to vector<8x32xf32>
    %89 = arith.addf %86, %88 : vector<8x32xf32>
    %90 = arith.addf %77, %89 : vector<8x32xf32>
    %c0_42 = arith.constant 0 : index
    %c0_43 = arith.constant 0 : index
    %91 = vector.load %arg17[%c0_42, %c0_43] : memref<1x32xf32, #tpu.memory_space<vmem>>, vector<1x32xf32>
    %c0_44 = arith.constant 0 : index
    %c0_45 = arith.constant 0 : index
    %92 = vector.load %arg18[%c0_44, %c0_45] : memref<1x32xf32, #tpu.memory_space<vmem>>, vector<1x32xf32>
    %cst_46 = arith.constant dense<0.000000e+00> : vector<8xf32>
    %93 = vector.multi_reduction <add>, %90, %cst_46 [1] : vector<8x32xf32> to vector<8xf32>
    %94 = vector.shape_cast %93 : vector<8xf32> to vector<8x1xf32>
    %cst_47 = arith.constant 3.200000e+01 : f32
    %95 = vector.broadcast %cst_47 : f32 to vector<8x1xf32>
    %96 = arith.divf %94, %95 : vector<8x1xf32>
    %97 = vector.broadcast %96 : vector<8x1xf32> to vector<8x32xf32>
    %98 = arith.subf %90, %97 : vector<8x32xf32>
    %99 = vector.broadcast %96 : vector<8x1xf32> to vector<8x32xf32>
    %100 = arith.subf %90, %99 : vector<8x32xf32>
    %101 = arith.mulf %98, %100 : vector<8x32xf32>
    %cst_48 = arith.constant dense<0.000000e+00> : vector<8xf32>
    %102 = vector.multi_reduction <add>, %101, %cst_48 [1] : vector<8x32xf32> to vector<8xf32>
    %103 = vector.shape_cast %102 : vector<8xf32> to vector<8x1xf32>
    %cst_49 = arith.constant 3.200000e+01 : f32
    %104 = vector.broadcast %cst_49 : f32 to vector<8x1xf32>
    %105 = arith.divf %103, %104 : vector<8x1xf32>
    %106 = vector.broadcast %96 : vector<8x1xf32> to vector<8x32xf32>
    %107 = arith.subf %90, %106 : vector<8x32xf32>
    %cst_50 = arith.constant 9.99999974E-6 : f32
    %108 = vector.broadcast %cst_50 : f32 to vector<8x1xf32>
    %109 = arith.addf %105, %108 : vector<8x1xf32>
    %110 = math.rsqrt %109 : vector<8x1xf32>
    %111 = vector.broadcast %110 : vector<8x1xf32> to vector<8x32xf32>
    %112 = arith.mulf %107, %111 : vector<8x32xf32>
    %113 = vector.broadcast %91 : vector<1x32xf32> to vector<8x32xf32>
    %114 = arith.mulf %112, %113 : vector<8x32xf32>
    %115 = vector.broadcast %92 : vector<1x32xf32> to vector<8x32xf32>
    %116 = arith.addf %114, %115 : vector<8x32xf32>
    %c0_51 = arith.constant 0 : index
    %c0_52 = arith.constant 0 : index
    %c0_53 = arith.constant 0 : index
    %117 = vector.load %arg19[%c0_51, %c0_52, %c0_53] : memref<1x8x32xf32, #tpu.memory_space<vmem>>, vector<1x8x32xf32>
    %118 = vector.shape_cast %117 : vector<1x8x32xf32> to vector<8x32xf32>
    %119 = vector.shape_cast %116 : vector<8x32xf32> to vector<1x8x32xf32>
    tpu.vector_store %arg19[%c0_51, %c0_52, %c0_53], %119 {strides = array<i32>} : memref<1x8x32xf32, #tpu.memory_space<vmem>>, vector<1x8x32xf32>,
    return
  }
  func.func @transform_0(%arg0: i32, %arg1: i32) -> (i32, i32, i32) {
    %c0_i32 = arith.constant 0 : i32
    %c0_i32_0 = arith.constant 0 : i32
    %c0_i32_1 = arith.constant 0 : i32
    return %arg0, %c0_i32, %c0_i32_0 : i32, i32, i32
  }
  func.func @transform_1(%arg0: i32, %arg1: i32) -> (i32, i32) {
    %c0_i32 = arith.constant 0 : i32
    %c0_i32_0 = arith.constant 0 : i32
    %c0_i32_1 = arith.constant 0 : i32
    return %c0_i32, %c0_i32_0 : i32, i32
  }
  func.func @transform_2(%arg0: i32, %arg1: i32) -> (i32, i32) {
    %c0_i32 = arith.constant 0 : i32
    %c0_i32_0 = arith.constant 0 : i32
    %c0_i32_1 = arith.constant 0 : i32
    return %c0_i32, %c0_i32_0 : i32, i32
  }
  func.func @transform_3(%arg0: i32, %arg1: i32) -> (i32, i32) {
    %c0_i32 = arith.constant 0 : i32
    %c0_i32_0 = arith.constant 0 : i32
    %c0_i32_1 = arith.constant 0 : i32
    return %c0_i32, %c0_i32_0 : i32, i32
  }
  func.func @transform_4(%arg0: i32, %arg1: i32) -> (i32, i32) {
    %c0_i32 = arith.constant 0 : i32
    %c0_i32_0 = arith.constant 0 : i32
    %c0_i32_1 = arith.constant 0 : i32
    return %c0_i32, %c0_i32_0 : i32, i32
  }
  func.func @transform_5(%arg0: i32, %arg1: i32) -> (i32, i32) {
    %c0_i32 = arith.constant 0 : i32
    %c0_i32_0 = arith.constant 0 : i32
    %c0_i32_1 = arith.constant 0 : i32
    return %c0_i32, %c0_i32_0 : i32, i32
  }
  func.func @transform_6(%arg0: i32, %arg1: i32) -> (i32, i32) {
    %c0_i32 = arith.constant 0 : i32
    %c0_i32_0 = arith.constant 0 : i32
    %c0_i32_1 = arith.constant 0 : i32
    return %c0_i32, %c0_i32_0 : i32, i32
  }
  func.func @transform_7(%arg0: i32, %arg1: i32) -> (i32, i32) {
    %c0_i32 = arith.constant 0 : i32
    %c0_i32_0 = arith.constant 0 : i32
    %c0_i32_1 = arith.constant 0 : i32
    return %c0_i32, %c0_i32_0 : i32, i32
  }
  func.func @transform_8(%arg0: i32, %arg1: i32) -> (i32, i32) {
    %c0_i32 = arith.constant 0 : i32
    %c0_i32_0 = arith.constant 0 : i32
    %c0_i32_1 = arith.constant 0 : i32
    return %c0_i32, %c0_i32_0 : i32, i32
  }
  func.func @transform_9(%arg0: i32, %arg1: i32) -> (i32, i32) {
    %c0_i32 = arith.constant 0 : i32
    %c0_i32_0 = arith.constant 0 : i32
    %c0_i32_1 = arith.constant 0 : i32
    return %c0_i32, %c0_i32_0 : i32, i32
  }
  func.func @transform_10(%arg0: i32, %arg1: i32) -> (i32, i32) {
    %c0_i32 = arith.constant 0 : i32
    %c0_i32_0 = arith.constant 0 : i32
    %c0_i32_1 = arith.constant 0 : i32
    return %c0_i32, %c0_i32_0 : i32, i32
  }
  func.func @transform_11(%arg0: i32, %arg1: i32) -> (i32, i32) {
    %c0_i32 = arith.constant 0 : i32
    %c0_i32_0 = arith.constant 0 : i32
    %c0_i32_1 = arith.constant 0 : i32
    return %c0_i32, %c0_i32_0 : i32, i32
  }
  func.func @transform_12(%arg0: i32, %arg1: i32) -> (i32, i32) {
    %c0_i32 = arith.constant 0 : i32
    %c0_i32_0 = arith.constant 0 : i32
    %c0_i32_1 = arith.constant 0 : i32
    return %c0_i32, %c0_i32_0 : i32, i32
  }
  func.func @transform_13(%arg0: i32, %arg1: i32) -> (i32, i32) {
    %c0_i32 = arith.constant 0 : i32
    %c0_i32_0 = arith.constant 0 : i32
    %c0_i32_1 = arith.constant 0 : i32
    return %c0_i32, %c0_i32_0 : i32, i32
  }
  func.func @transform_14(%arg0: i32, %arg1: i32) -> (i32, i32) {
    %c0_i32 = arith.constant 0 : i32
    %c0_i32_0 = arith.constant 0 : i32
    %c0_i32_1 = arith.constant 0 : i32
    return %c0_i32, %c0_i32_0 : i32, i32
  }
  func.func @transform_15(%arg0: i32, %arg1: i32) -> (i32, i32) {
    %c0_i32 = arith.constant 0 : i32
    %c0_i32_0 = arith.constant 0 : i32
    %c0_i32_1 = arith.constant 0 : i32
    return %c0_i32, %c0_i32_0 : i32, i32
  }
  func.func @transform_16(%arg0: i32, %arg1: i32) -> (i32, i32) {
    %c0_i32 = arith.constant 0 : i32
    %c0_i32_0 = arith.constant 0 : i32
    %c0_i32_1 = arith.constant 0 : i32
    return %c0_i32, %c0_i32_0 : i32, i32
  }
  func.func @transform_17(%arg0: i32, %arg1: i32) -> (i32, i32, i32) {
    %c0_i32 = arith.constant 0 : i32
    %c0_i32_0 = arith.constant 0 : i32
    return %arg0, %arg1, %c0_i32 : i32, i32, i32
  }
}

</mosaic_0001>

<bundles_post_ra>
// kernel: tpu_custom_call.1
= control target key start
LH: loop header
LB: loop body
LE: loop exit
PB: predicated region body
PF: predicated region fallthrough
CT: control target
= control target key end

     0   :  { %s3110_s0 = inlined_call_operand.hbm [shape: f32[2,8,32], index: 0, kind: input, shape index: {}]   ;;  %s3111_s1 = inlined_call_operand.vmem [shape: f32[32,32], index: 1, kind: input, shape index: {}]   ;;  %s3112_s2 = inlined_call_operand.vmem [shape: f32[32,32], index: 2, kind: input, shape index: {}]   ;;  %s3113_s3 = inlined_call_operand.vmem [shape: f32[32,32], index: 3, kind: input, shape index: {}]   ;;  %s3114_s4 = inlined_call_operand.vmem [shape: f32[1,32], index: 4, kind: input, shape index: {}]   ;;  %s3115_s5 = inlined_call_operand.vmem [shape: f32[1,32], index: 5, kind: input, shape index: {}]   ;;  %s3116_s6 = inlined_call_operand.vmem [shape: f32[1,32], index: 6, kind: input, shape index: {}]   ;;  %s3117_s7 = inlined_call_operand.hbm [shape: f32[32,32], index: 7, kind: input, shape index: {}]   ;;  %s3118_s8 = inlined_call_operand.vmem [shape: f32[1,32], index: 8, kind: input, shape index: {}]   ;;  %s3119_s9 = inlined_call_operand.vmem [shape: f32[1,32], index: 9, kind: input, shape index: {}]   ;;  %s3120_s10 = inlined_call_operand.vmem [shape: f32[1,32], index: 10, kind: input, shape index: {}]   ;;  %s3121_s11 = inlined_call_operand.hbm [shape: f32[32,64], index: 11, kind: input, shape index: {}]   ;;  %s3122_s12 = inlined_call_operand.vmem [shape: f32[1,64], index: 12, kind: input, shape index: {}]   ;;  %s3123_s13 = inlined_call_operand.vmem [shape: f32[64,32], index: 13, kind: input, shape index: {}]   ;;  %s3124_s14 = inlined_call_operand.vmem [shape: f32[1,32], index: 14, kind: input, shape index: {}]   ;;  %s3125_s15 = inlined_call_operand.vmem [shape: f32[1,32], index: 15, kind: input, shape index: {}]   ;;  %s3126_s16 = inlined_call_operand.vmem [shape: f32[1,32], index: 16, kind: input, shape index: {}]   ;;  %s3127_s17 = inlined_call_operand.hbm [shape: f32[2,8,32], index: 17, kind: output, shape index: {}]  }
   0x1   :  { %3137 = sst [smem:[#allocation17_spill]] %s3110_s0 }
   0x2   :  { %3138 = sst [smem:[#allocation18_spill]] %s3111_s1 }
   0x3   :  { %3139 = sst [smem:[#allocation19_spill]] %s3112_s2 }
   0x4   :  { %3140 = sst [smem:[#allocation20_spill]] %s3113_s3 }
   0x5   :  { %3141 = sst [smem:[#allocation21_spill]] %s3114_s4 }
   0x6   :  { %3142 = sst [smem:[#allocation22_spill]] %s3119_s9 }
   0x7   :  { %3143 = sst [smem:[#allocation23_spill]] %s3120_s10 }
   0x8   :  { %3144 = sst [smem:[#allocation24_spill]] %s3122_s12 }
   0x9   :  { %3145 = sst [smem:[#allocation25_spill]] %s3124_s14 }
   0xa   :  { %3146 = sst [smem:[#allocation26_spill]] %s3125_s15 }
   0xb   :  { %3147 = sst [smem:[#allocation27_spill]] %s3126_s16 }
   0xc   :  { %3148 = sst [smem:[#allocation28_spill]] %s3127_s17 }
   0xd   :  { %22 = vsyncpa [#allocation5], 0 }
   0xe   :  { %24 = vsyncpa [#allocation5 + $0x1], 0 }
   0xf   :  { %25 = vsyncpa [#allocation8], 0 }
  0x10   :  { %26 = vsyncpa [#allocation6], 0 }
  0x11   :  { %28 = vsyncpa [#allocation6 + $0x1], 0  ;;  %s2653_s24 = smov 0   ;;  %s2655_s25 = smov 0  }
  0x12   :  { %s2657_s26 = smov 0   ;;  %s2659_s27 = smov 0  }
  0x13   :  { %s2661_s28 = smov 0   ;;  %s2663_s29 = smov 0  }
  0x14 LB: > { %3149 = sst [smem:[#allocation14_spill]] %s2526_s24  ;;  %s2009_s0 = sadd.s32 4294967295, %s2546_s29   ;;  %s2546_s29 = sphi %s2663_s29, %s34_s29   ;;  %s2542_s28 = sphi %s2661_s28, %s3184_s28   ;;  %s2538_s27 = sphi %s2659_s27, %s3183_s27   ;;  %s2534_s26 = sphi %s2657_s26, %s3182_s26   ;;  %s2530_s25 = sphi %s2655_s25, %s3181_s25   ;;  %s2526_s24 = sphi %s2653_s24, %s3180_s24  }
  0x15   : > { %3150 = sst [smem:[#allocation15_spill]] %s2538_s27  ;;  %s2010_s30 = sadd.s32 4294967294, %s2546_s29  }
  0x16   : > { %p66_p0 = scmp.ne.s32.totalorder %s2530_s25, %s2526_s24  ;;  %p2687_p1 = scmp.eq.s32.totalorder %s2009_s0, 0 }
  0x17   : > { %p2691_p2 = scmp.eq.s32.totalorder %s2009_s0, 1  ;;  %p434_p3 = scmp.eq.s32.totalorder %s2010_s30, 1 }
  0x18   : > { %s3151_s18 = scalar_select %p2687_p1, 1, 0 }
  0x19   : > { %p2697_p4 = por %p2687_p1, %p66_p0  ;;  %p2011_p5 = scmp.ge.s32.totalorder %s2546_s29, 1 }
  0x1a   : > { %p2702_p6 = por %p434_p3, %p66_p0  ;;  %p441_p7 = scmp.lt.s32.totalorder %s2546_s29, 3 }
  0x1b   : > { %s3153_s1 = scalar_select %p2697_p4, 1, 0 }
  0x1c   : > { %s3154_s20 = scalar_select %p2702_p6, 1, 0 }
  0x1d   : > { %p2707_p8 = pnand %p2011_p5, %p441_p7  ;;  %s2548_s22 = smov [#allocation7]  }
  0x1e   : > { %3155 = sst [smem:[#allocation16_spill]] %s3154_s20  ;;  %s471_s23 = sshll.u32 %s2548_s22, 4  ;;  %s2711_s23 = int_to_ptr.vmem [resolvable:$true] %s471_s23 }
  0x1f   : > { %p2272_p9 = pneg %p2707_p8  ;;  %s2549_s30 = smov [#allocation9]  }
  0x20   : > { %s493_s20 = sshll.u32 %s2549_s30, 4  ;;  %s2374_s22 = scalar_lea.hbm %s3117_s7, 512  ;;  %s2722_s20 = int_to_ptr.vmem [resolvable:$true] %s493_s20 }
  0x21   : > { %p2718_p11 = pnand %p2272_p9, %p2687_p1  ;;  %p2375_p12 = scmp.ne.s32.totalorder %s3117_s7, %s2374_s22 }
  0x22   : > { %p2381_p5 = scmp.lt.u32.totalorder %s2374_s22, %s3117_s7 }
  0x23   : > { %p2376_p13 = pneg %p2718_p11 }
  0x25   : > { %p2377_p0 = pnand %p2376_p13, %p2375_p12 }
  0x27   : > { %p2378_p3 = pneg %p2377_p0 }
  0x29   : > { %p2383_p7 = pnand %p2381_p5, %p2378_p3 }
  0x2b   : > { %2386 = shalt.err (!%p2383_p7)
}
  0x2c   : > { %s2387_s17 = scalar_lea.vmem %s2711_s23, 512  ;;  %p2395_p1 = scmp.lt.s32.totalorder %s2711_s23, %s2711_s23 }
  0x2d   : > { %p2388_p9 = scmp.ne.s32.totalorder %s2711_s23, %s2387_s17  ;;  %p2396_p12 = scmp.lt.s32.totalorder %s2387_s17, %s2387_s17 }
  0x2f   : > { %p2390_p10 = pnand %p2388_p9, %p2376_p13  ;;  %p2397_p0 = por %p2396_p12, %p2395_p1 }
  0x31   : > { %p2391_p6 = pneg %p2390_p10 }
  0x33   : > { %p2398_p4 = pnand %p2397_p0, %p2391_p6 }
  0x35   : > { %2401 = shalt.err (!%p2398_p4)
}
  0x36   : > { %s2550_s14 = smov 128   ;;  %s2551_s15 = smov 8  }
  0x37   : > { %2275 = dma.hbm_to_vmem [thread:$0]  (!%p2718_p11), %s3117_s7, 512, %s2711_s23, [#allocation8], %s2550_s14, %s2550_s14, %s2551_s15  }
  0x38   : > { %s2402_s22 = scalar_lea.hbm %s3121_s11, 512 }
  0x39   : > { %p2403_p1 = scmp.ne.s32.totalorder %s3121_s11, %s2402_s22  ;;  %p2409_p10 = scmp.lt.u32.totalorder %s2402_s22, %s3121_s11 }
  0x3b   : > { %p2405_p4 = pnand %p2403_p1, %p2376_p13 }
  0x3d   : > { %p2406_p6 = pneg %p2405_p4 }
  0x3f   : > { %p2411_p3 = pnand %p2409_p10, %p2406_p6 }
  0x41   : > { %2414 = shalt.err (!%p2411_p3)
}
  0x42   : > { %s2415_s23 = scalar_lea.vmem %s2722_s20, 512  ;;  %p2423_p12 = scmp.lt.s32.totalorder %s2722_s20, %s2722_s20 }
  0x43   : > { %p2416_p5 = scmp.ne.s32.totalorder %s2722_s20, %s2415_s23  ;;  %p2424_p0 = scmp.lt.s32.totalorder %s2415_s23, %s2415_s23 }
  0x45   : > { %p2418_p7 = pnand %p2416_p5, %p2376_p13  ;;  %p2425_p1 = por %p2424_p0, %p2423_p12 }
  0x47   : > { %p2419_p9 = pneg %p2418_p7 }
  0x49   : > { %p2426_p4 = pnand %p2425_p1, %p2419_p9 }
  0x4b   : > { %2429 = shalt.err (!%p2426_p4)
}
  0x4c   : > { %2278 = dma.hbm_to_vmem [thread:$0]  (!%p2718_p11), %s3121_s11, 512, %s2722_s20, [#allocation8], %s2550_s14, %s2550_s14, %s2551_s15  }
  0x4d   : > { %s46_s12 = sadd.s32 1, %s2542_s28  ;;  %s53_s16 = sadd.s32 1, %s2534_s26 }
  0x4e   : > { %p48_p13 = scmp.ge.s32.totalorder %s46_s12, 2  ;;  %p60_p6 = scmp.ne.s32.totalorder %s2534_s26, %s2530_s25 }
  0x4f   : > { %p61_p10 = scmp.eq.s32.totalorder %s2546_s29, 0  ;;  %p2289_p3 = scmp.lt.s32.totalorder %s2546_s29, 2 }
  0x50   : > { %s3186_s12 = smov (%p48_p13, %s46_s12), 0  ;;  %p2786_p7 = por %p2691_p2, %p60_p6 }
  0x51   : > { %p62_p5 = por %p61_p10, %p60_p6  ;;  %s50_s24 = ssub.s32 %s2542_s28, %s3186_s12 }
  0x52   : > { %s3158_s0 = scalar_select %p2786_p7, 1, 0 }
  0x53   : > { %s522_s27 = sand.u32 1, %s2534_s26   ;;  %p51_p9 = scmp.eq.s32.totalorder %s50_s24, 0 }
  0x54   : > { %s2015_s20 = sshll.u32 %s522_s27, 3  ;;  %s2016_s14 = sshll.u32 %s2542_s28, 7 }
  0x55   : > { %s2795_s15 = scalar_select %p51_p9, %s2534_s26, %s53_s16  }
  0x56   : > { %s3159_s17 = sld [smem:[#allocation17_spill]]  ;;  %s526_s19 = scalar_lea.vmem [#allocation4], %s2015_s20 }
  0x57   : > { %s533_s9 = sshll.u32 %s526_s19, 4  ;;  %p2804_p2 = pnand %p2289_p3, %p62_p5  ;;  %s2808_s9 = int_to_ptr.vmem [resolvable:$true] %s533_s9 }
  0x58   : > { %s523_s16 = scalar_lea.sflag [#allocation5], %s522_s27 }
  0x59   : > { %p2432_p12 = pneg %p2804_p2 }
  0x5c   : > { %s2800_s23 = scalar_lea.hbm %s3159_s17, %s2016_s14  ;;  %s2435_s30 = scalar_lea.hbm %s3159_s17, 256 }
  0x5d   : > { %s2430_s24 = scalar_lea.hbm %s2800_s23, 128  ;;  %p2436_p4 = scmp.lt.u32.totalorder %s2800_s23, %s3159_s17 }
  0x5e   : > { %p2431_p11 = scmp.ne.s32.totalorder %s2800_s23, %s2430_s24  ;;  %p2437_p13 = scmp.lt.u32.totalorder %s2435_s30, %s2430_s24 }
  0x5f   : > { %p2439_p10 = scmp.lt.u32.totalorder %s2430_s24, %s2800_s23 }
  0x60   : > { %p2433_p0 = pnand %p2432_p12, %p2431_p11  ;;  %p2438_p6 = por %p2437_p13, %p2436_p4 }
  0x62   : > { %p2434_p1 = pneg %p2433_p0  ;;  %p2440_p3 = por %p2439_p10, %p2438_p6 }
  0x64   : > { %p2441_p5 = pnand %p2440_p3, %p2434_p1 }
  0x66   : > { %2444 = shalt.err (!%p2441_p5)
}
  0x67   : > { %s2445_s27 = scalar_lea.vmem %s2808_s9, 128  ;;  %s2552_s20 = smov [#allocation4]  }
  0x68   : > { %p2446_p9 = scmp.ne.s32.totalorder %s2808_s9, %s2445_s27  ;;  %s2450_s14 = sshll.u32 %s2552_s20, 4  ;;  %s2451_s14 = int_to_ptr.vmem [resolvable:$false] %s2450_s14 }
  0x69   : > { %s2452_s22 = scalar_lea.vmem %s2451_s14, 256  ;;  %p2453_p7 = scmp.lt.s32.totalorder %s2808_s9, %s2451_s14 }
  0x6a   : > { %p2448_p11 = pnand %p2446_p9, %p2432_p12  ;;  %p2454_p4 = scmp.lt.s32.totalorder %s2452_s22, %s2445_s27 }
  0x6c   : > { %p2449_p0 = pneg %p2448_p11  ;;  %p2455_p13 = por %p2454_p4, %p2453_p7 }
  0x6e   : > { %p2456_p6 = pnand %p2455_p13, %p2449_p0 }
  0x70   : > { %2459 = shalt.err (!%p2456_p6)
}
  0x71   : > { %2282 = dma.hbm_to_vmem [thread:$0]  (!%p2804_p2), %s2800_s23, 128, %s2808_s9, %s523_s16  }
  0x72   : > { %542 = sbr.rel (%p2707_p8) target bundleno = 2634 (0xa4a), region = 88  ;;  %s2838_s24 = sand.u32 (!%p2707_p8), 1, %s2530_s25  }
  0x73   : > { %s2018_s30 = sshll.u32 (!%p2707_p8), %s2838_s24, 3  ;;  %s545_s19 = scalar_lea.sflag (!%p2707_p8), [#allocation5], %s2838_s24 }
  0x74   : > { %s2844_s27 = scalar_lea.vmem (!%p2707_p8), [#allocation4], %s2018_s30  ;;  %p3161_p7 = scmp.ne.s32.totalorder (!%p2707_p8), %s3153_s1, 0 }
  0x79   : > { %2513 = dma.done.wait (%p3161_p7), %s545_s19, 128  }
  0x7a   : > { %2515 = vsyncadd (%p3161_p7), %s545_s19, 4294967168  ;;  %p3162_p2 = scmp.ne.s32.totalorder %s3151_s18, 0 }
  0x7c   : > { %2517 = dma.done.wait (%p3162_p2), [#allocation8], 1024  }
  0x7d   : > { %2519 = vsyncadd (%p3162_p2), [#allocation8], 4294966272  ;;  %v2553_v0 = vmov 0.0|0.0   ;;  %vm2554_vm0 = vmmov 0   ;;  %v2555_v1 = vmov 0.0   ;;  %s3163_s2 = sld [smem:[#allocation19_spill]] }
  0x7e   : > { %2218 = vmatprep.subr.bf16.mxu1 %v2553_v0  ;;  %2112 = vmatprep.mubr.msk.f32.mxu1 %vm2554_vm0, %v2555_v1  ;;  %s3164_s19 = sld [smem:[#allocation18_spill]]  ;;  %s3165_s3 = sld [smem:[#allocation20_spill]]  ;;  %v2893_v16 = vld [vmem:[%s2844_s27] sm:$0xff]  ;;  %vm623_vm1 = vcmask 261120   ;;  %vm778_vm2 = vcmask 64512   ;;  %vm1570_vm3 = vcmask 130048  }
  0x7f   : > { %2230 = vmatprep.subr.bf16.mxu0 %v2553_v0  ;;  %2134 = vmatprep.mubr.msk.f32.mxu0 %vm2554_vm0, %v2555_v1  ;;  %v2022_v21 = vld [vmem:[%s3115_s5] ss:$0 sm:$0xff]  ;;  %s3166_s4 = sld [smem:[#allocation21_spill]]  ;;  %s2556_s20 = smov 104   ;;  %vm1572_vm4 = vcmask 195584   ;;  %vm1789_vm5 = vcmask 523264  }
  0x80   : > { %s2557_s14 = smov 120   ;;  %s2558_s22 = smov 112   ;;  %v2024_v30 = vld [vmem:[%s3116_s6] ss:$0 sm:$0xff] }
  0x81   : > { %s2559_s21 = smov 8   ;;  %s2560_s23 = smov 16  }
  0x82   : > { %s2561_s18 = smov 24   ;;  %s3170_s1 = sld [smem:[#allocation25_spill]] }
  0x83   : > { %v612_v2 = vld [vmem:[%s3163_s2] sm:$0xff]  ;;  %v613_v3 = vld [vmem:[%s3163_s2 + $0x8] sm:$0xff]  ;;  %v614_v4 = vld [vmem:[%s3163_s2 + $0x10] sm:$0xff]  ;;  %s3172_s9 = sld [smem:[#allocation26_spill]]  ;;  %p3175_p12 = scmp.ne.s32.totalorder %s3158_s0, 0 }
  0x84   : > { %v2219_v5 = vpack.c.bf16 %v613_v3, %v612_v2  ;;  %v615_v6 = vld [vmem:[%s3163_s2 + $0x18] sm:$0xff]  ;;  %v816_v7 = vld [vmem:[%s3164_s19] sm:$0xff]  ;;  %v817_v8 = vld [vmem:[%s3164_s19 + $0x8] sm:$0xff] }
  0x85   : > { %v818_v9 = vld [vmem:[%s3164_s19 + $0x10] sm:$0xff]  ;;  %v819_v10 = vld [vmem:[%s3164_s19 + $0x18] sm:$0xff]  ;;  %v2222_v11 = vpack.c.bf16 %v615_v6, %v614_v4  ;;  %v2231_v12 = vpack.c.bf16 %v817_v8, %v816_v7  ;;  %v697_v13 = vld [vmem:[%s3165_s3] sm:$0xff] }
  0x86   : > { %2220 = vmatpush3.bf16.msra.mxu1 %v2219_v5  ;;  %v698_v14 = vld [vmem:[%s3165_s3 + $0x8] sm:$0xff]  ;;  %v2234_v15 = vpack.c.bf16 %v819_v10, %v818_v9  ;;  %v699_v18 = vld [vmem:[%s3165_s3 + $0x10] sm:$0xff]  ;;  %v700_v19 = vld [vmem:[%s3165_s3 + $0x18] sm:$0xff]  ;;  %s3174_s3 = sld [smem:[#allocation28_spill]] }
  0x87   : > { %2221 = vmatprep.subr.bf16.mxu1 %v2553_v0  ;;  %2232 = vmatpush3.bf16.msra.mxu0 %v2231_v12  ;;  %v2225_v17 = vpack.c.bf16 %v698_v14, %v697_v13  ;;  %v2228_v20 = vpack.c.bf16 %v700_v19, %v699_v18  ;;  %v2026_v23 = vld [vmem:[%s3166_s4] ss:$0 sm:$0xff] }
  0x88   : > { %2233 = vmatprep.subr.bf16.mxu0 %v2553_v0 }
  0x8a   : > { %2223 = vmatpush3.bf16.msra.mxu1 %v2222_v11 }
  0x8b   : > { %2224 = vmatprep.subr.bf16.mxu1 %v2553_v0  ;;  %2235 = vmatpush3.bf16.msra.mxu0 %v2234_v15 }
  0x8c   : > { %2147 = vmatprep.subr.mxu0 %v2555_v1 }
  0x8d   : > { %2113 = vmatmul.mubr.msk.f32.vlgmr.msra.gmra.mrb[0].mxu1 %vm623_vm1, %v2893_v16 }
  0x8e   : > { %2226 = vmatpush3.bf16.msra.mxu1 %v2225_v17  ;;  %2123 = vmatprep.mubr.msk.f32.mxu1 %vm2554_vm0, %v2555_v1 }
  0x8f   : > { %2135 = vmatmul.mubr.msk.f32.vlgmr.msra.gmra.mrb[0].mxu0 %vm623_vm1, %v2893_v16  ;;  %2227 = vmatprep.subr.bf16.mxu1 %v2553_v0 }
  0x90   : > { %2149 = vmatprep.mubr.msk.f32.mxu0 %vm2554_vm0, %v2555_v1 }
  0x92   : > { %2229 = vmatpush3.bf16.msra.mxu1 %v2228_v20 }
  0x93   : > { %2137 = vmatprep.subr.mxu1 %v2555_v1 }
  0x95   : > { %2124 = vmatmul.mubr.msk.f32.vlgmr.msra.gmra.mrb[2].mxu1 %vm623_vm1, %v2893_v16 }
  0x96   : > { %2139 = vmatprep.mubr.msk.f32.mxu1 %vm2554_vm0, %v2555_v1 }
 0x160   : > { %v693_v22 = vpop.f32.mrb[0].mxu1 }
 0x161   : > { %v694_v24 = vadd.f32 %v2022_v21, %v693_v22  ;;  %v2114_v25 = vpop.f32.mrb[1].mxu1 }
 0x162   : > { %v897_v26 = vpop.f32.mrb[0].mxu0 }
 0x163   : > { %779 = vst.msk [vmem:[#allocation2] sm:$0xff] %vm778_vm2, %v694_v24  ;;  %803 = vrot.lane.b32.xlu1 %v694_v24, %s2556_s20  ;;  %782 = vrot.lane.b32.xlu0 %v694_v24, %s2557_s14  ;;  %v898_v27 = vadd.f32 %v2026_v23, %v897_v26  ;;  %v2136_v28 = vpop.f32.mrb[1].mxu0 }
 0x167   : > { %793 = vrot.lane.b32.xlu0 %v694_v24, %s2558_s22  ;;  %902 = vrot.lane.b32.xlu1 %v898_v27, %s2557_s14 }
 0x168   : > { %v774_v31 = vpop.f32.mrb[2].mxu1 }
 0x169   : > { %v2938_v32 = vadd.f32 %v2024_v30, %v774_v31  ;;  %v2125_v33 = vpop.f32.mrb[3].mxu1 }
 0x16a   : > { %v908_v29 = vld [vmem:[#allocation2] sm:$0xff] }
 0x16b   : > { %2138 = vmatpush3.xpose.msk.msra.mxu1 %vm778_vm2, %v908_v29  ;;  %906 = vrot.lane.b32.xlu1 %v898_v27, %s2556_s20  ;;  %780 = vst.msk [vmem:[#allocation3] sm:$0xff] %vm778_vm2, %v2938_v32 }
 0x16c   : > { %904 = vrot.lane.b32.xlu0 %v898_v27, %s2558_s22  ;;  %2142 = vmatprep.subr.mxu1 %v2555_v1 }
 0x16e   : > { %2140 = vmatmul.mubr.msk.f32.vlgmr.msra.gmra.mrb[4].mxu1 %vm778_vm2, %v898_v27 }
 0x16f   : > { %2144 = vmatprep.mubr.msk.f32.mxu1 %vm2554_vm0, %v2555_v1 }
 0x172   : > { %v912_v43 = vld [vmem:[#allocation3] sm:$0xff] }
 0x1d5   : > { %v804_v34 = vpop.permute.xlu1 %803  ;;  %v783_v35 = vpop.permute.xlu0 %782 }
 0x1d6   : > { %807 = vst.msk [vmem:[#allocation2 + $0x18] sm:$0xff] %vm778_vm2, %v804_v34  ;;  %786 = vst.msk [vmem:[#allocation2 + $0x8] sm:$0xff] %vm778_vm2, %v783_v35 }
 0x1d9   : > { %v794_v36 = vpop.permute.xlu0 %793  ;;  %v903_v37 = vpop.permute.xlu1 %902 }
 0x1da   : > { %797 = vst.msk [vmem:[#allocation2 + $0x10] sm:$0xff] %vm778_vm2, %v794_v36 }
 0x1dd   : > { %v909_v38 = vld [vmem:[#allocation2 + $0x8] sm:$0xff]  ;;  %v911_v40 = vld [vmem:[#allocation2 + $0x18] sm:$0xff]  ;;  %v907_v41 = vpop.permute.xlu1 %906 }
 0x1de   : > { %2143 = vmatpush3.xpose.msk.msra.mxu1 %vm778_vm2, %v909_v38  ;;  %v905_v42 = vpop.permute.xlu0 %904 }
 0x1df   : > { %2152 = vmatprep.subr.mxu1 %v2555_v1 }
 0x1e1   : > { %2145 = vmatmul.mubr.msk.f32.vlgmr.msra.gmra.mrb[6].mxu1 %vm778_vm2, %v903_v37  ;;  %v910_v39 = vld [vmem:[#allocation2 + $0x10] sm:$0xff] }
 0x1e2   : > { %2148 = vmatpush3.xpose.msk.msra.mxu0 %vm778_vm2, %v910_v39  ;;  %2153 = vmatpush3.xpose.msk.msra.mxu1 %vm778_vm2, %v911_v40  ;;  %v1574_v39 = vld [vmem:[#allocation7] sm:$0xff]  ;;  %v1575_v40 = vld [vmem:[#allocation7 + $0x8] sm:$0xff] }
 0x1e3   : > { %2154 = vmatprep.mubr.msk.f32.mxu1 %vm2554_vm0, %v2555_v1  ;;  %2157 = vmatprep.subr.mxu0 %v2555_v1 }
 0x1e4   : > { %2162 = vmatprep.subr.mxu1 %v2555_v1 }
 0x1e5   : > { %2150 = vmatmul.mubr.msk.f32.vlgmr.msra.gmra.mrb[2].mxu0 %vm778_vm2, %v905_v42  ;;  %2155 = vmatmul.mubr.msk.f32.vlgmr.msra.gmra.mrb[8].mxu1 %vm778_vm2, %v907_v41  ;;  %v1576_v41 = vld [vmem:[#allocation7 + $0x10] sm:$0xff]  ;;  %v2237_v42 = vpack.c.bf16 %v1575_v40, %v1574_v39 }
 0x1e6   : > { %2159 = vmatprep.mubr.msk.f32.mxu0 %vm2554_vm0, %v2555_v1  ;;  %2164 = vmatprep.mubr.msk.f32.mxu1 %vm2554_vm0, %v2555_v1 }
 0x1e7   : > { %2158 = vmatpush3.msra.mxu0 %v912_v43  ;;  %v1577_v43 = vld [vmem:[#allocation7 + $0x18] sm:$0xff] }
 0x1e8   : > { %2167 = vmatprep.subr.mxu0 %v2555_v1 }
 0x241   : > { %v988_v44 = vpop.f32.mrb[4].mxu1 }
 0x242   : > { %v1217_v45 = vmul.f32 0.35355338, %v988_v44  ;;  %v2141_v46 = vpop.f32.mrb[5].mxu1  ;;  %v2240_v44 = vpack.c.bf16 %v1577_v43, %v1576_v41 }
 0x244   : > { %v1221_v47 = vsel %vm778_vm2, %v1217_v45, -inf }
 0x245   : > { %1222 = vmax.xlane.f32.xlu0 %v1221_v47 }
 0x2b4   : > { %v1063_v48 = vpop.f32.mrb[6].mxu1 }
 0x2b5   : > { %v1218_v49 = vmul.f32 0.35355338, %v1063_v48  ;;  %v2146_v50 = vpop.f32.mrb[7].mxu1 }
 0x2b7   : > { %v1224_v51 = vsel %vm778_vm2, %v1218_v49, -inf }
 0x2b8   : > { %v1138_v52 = vpop.f32.mrb[2].mxu0  ;;  %1225 = vmax.xlane.f32.xlu1 %v1224_v51  ;;  %v1213_v53 = vpop.f32.mrb[8].mxu1 }
 0x2b9   : > { %v1219_v54 = vmul.f32 0.35355338, %v1138_v52  ;;  %v2151_v55 = vpop.f32.mrb[3].mxu0  ;;  %v2156_v56 = vpop.f32.mrb[9].mxu1  ;;  %v1220_v57 = vmul.f32 0.35355338, %v1213_v53 }
 0x2bb   : > { %v1227_v58 = vsel %vm778_vm2, %v1219_v54, -inf  ;;  %v1230_v59 = vsel %vm778_vm2, %v1220_v57, -inf }
 0x2bc   : > { %1228 = vmax.xlane.f32.xlu0 %v1227_v58 }
 0x2c0   : > { %1231 = vmax.xlane.f32.xlu0 %v1230_v59 }
 0x2c9   : > { %788 = vrot.lane.b32.xlu1 %v2938_v32, %s2557_s14  ;;  %s3169_s14 = sld [smem:[#allocation24_spill]] }
 0x2d2   : > { %v1223_v60 = vpop.xlane.xlu0 %1222 }
 0x2d3   : > { %v1233_v61 = vsub.f32 %v1217_v45, %v1223_v60 }
 0x2d5   : > { %v1237_v62 = vmul.f32 1.442695, %v1233_v61 }
 0x2d7   : > { %2354 = vpow2.f32 %v1237_v62 }
 0x2e1   : > { %v2355_v63 = vpop.eup %2354 }
 0x2e2   : > { %v1245_v2 = vsel %vm778_vm2, %v2355_v63, 0.0 }
 0x2ed   : > { %1246 = vadd.xlane.f32.xlu1 %v1245_v2 }
 0x345   : > { %v1226_v3 = vpop.xlane.xlu1 %1225 }
 0x346   : > { %v1234_v4 = vsub.f32 %v1218_v49, %v1226_v3 }
 0x348   : > { %v1239_v5 = vmul.f32 1.442695, %v1234_v4 }
 0x349   : > { %v1229_v6 = vpop.xlane.xlu0 %1228  ;;  %v789_v7 = vpop.permute.xlu1 %788 }
 0x34a   : > { %2356 = vpow2.f32 %v1239_v5  ;;  %v1235_v8 = vsub.f32 %v1219_v54, %v1229_v6  ;;  %792 = vst.msk [vmem:[#allocation3 + $0x8] sm:$0xff] %vm778_vm2, %v789_v7  ;;  %v1690_v6 = vld [vmem:[#allocation9 + $0x8] sm:$0xff] }
 0x34c   : > { %v1241_v9 = vmul.f32 1.442695, %v1235_v8  ;;  %v1691_v8 = vld [vmem:[#allocation9 + $0x10] sm:$0xff] }
 0x34d   : > { %v1232_v10 = vpop.xlane.xlu0 %1231 }
 0x34e   : > { %2358 = vpow2.f32 %v1241_v9  ;;  %v1236_v11 = vsub.f32 %v1220_v57, %v1232_v10  ;;  %v2040_v57 = vld [vmem:[%s3118_s8] ss:$0 sm:$0xff]  ;;  %v1692_v9 = vld [vmem:[#allocation9 + $0x18] sm:$0xff] }
 0x34f   : > { %v2246_v10 = vpack.c.bf16 %v1692_v9, %v1691_v8 }
 0x350   : > { %v1243_v12 = vmul.f32 1.442695, %v1236_v11  ;;  %v1775_v11 = vld [vmem:[%s3123_s13 + $0x8] sm:$0xff] }
 0x351   : > { %v913_v13 = vld [vmem:[#allocation3 + $0x8] sm:$0xff] }
 0x352   : > { %2360 = vpow2.f32 %v1243_v12  ;;  %2163 = vmatpush3.msra.mxu1 %v913_v13  ;;  %v1776_v12 = vld [vmem:[%s3123_s13 + $0x10] sm:$0xff] }
 0x353   : > { %2172 = vmatprep.subr.mxu1 %v2555_v1 }
 0x354   : > { %v2357_v14 = vpop.eup %2356 }
 0x355   : > { %v1248_v15 = vsel %vm778_vm2, %v2357_v14, 0.0 }
 0x356   : > { %1249 = vadd.xlane.f32.xlu0 %v1248_v15 }
 0x358   : > { %v2359_v17 = vpop.eup %2358 }
 0x359   : > { %v1251_v18 = vsel %vm778_vm2, %v2359_v17, 0.0 }
 0x35a   : > { %1252 = vadd.xlane.f32.xlu1 %v1251_v18  ;;  %v1779_v18 = vld [vmem:[%s3123_s13 + $0x28] sm:$0xff] }
 0x35c   : > { %v2361_v19 = vpop.eup %2360 }
 0x35d   : > { %v1254_v20 = vsel %vm778_vm2, %v2361_v19, 0.0 }
 0x35e   : > { %1255 = vadd.xlane.f32.xlu0 %v1254_v20 }
 0x36b   : > { %808 = vrot.lane.b32.xlu1 %v2938_v32, %s2556_s20  ;;  %s3173_s20 = sld [smem:[#allocation27_spill]] }
 0x374   : > { %798 = vrot.lane.b32.xlu0 %v2938_v32, %s2558_s22  ;;  %s3167_s22 = sld [smem:[#allocation22_spill]] }
 0x37a   : > { %v1247_v21 = vpop.xlane.xlu1 %1246 }
 0x37b   : > { %2362 = vrcp.f32 %v1247_v21 }
 0x385   : > { %v2363_v22 = vpop.eup %2362 }
 0x386   : > { %v1258_v23 = vmul.f32 %v2363_v22, %v2355_v63 }
 0x388   : > { %2160 = vmatmul.mubr.msk.f32.vlgmr.msra.gmra.mrb[4].mxu0 %vm778_vm2, %v1258_v23 }
 0x389   : > { %2169 = vmatprep.mubr.msk.f32.mxu0 %vm2554_vm0, %v2555_v1 }
 0x3e3   : > { %v1250_v24 = vpop.xlane.xlu0 %1249 }
 0x3e4   : > { %2364 = vrcp.f32 %v1250_v24  ;;  %v2042_v24 = vld [vmem:[%s3167_s22] ss:$0 sm:$0xff]  ;;  %s606_s22 = scalar_lea.vmem [#allocation10], %s2018_s30  ;;  %s2562_s30 = smov [#allocation10]  }
 0x3e5   : > { %s1909_s27 = sshll.u32 %s606_s22, 4  ;;  %s3062_s27 = int_to_ptr.vmem [resolvable:$true] %s1909_s27 }
 0x3e7   : > { %v1253_v25 = vpop.xlane.xlu1 %1252 }
 0x3e8   : > { %2366 = vrcp.f32 %v1253_v25 }
 0x3eb   : > { %v809_v26 = vpop.permute.xlu1 %808  ;;  %v1256_v27 = vpop.xlane.xlu0 %1255 }
 0x3ec   : > { %812 = vst.msk [vmem:[#allocation3 + $0x18] sm:$0xff] %vm778_vm2, %v809_v26  ;;  %2368 = vrcp.f32 %v1256_v27 }
 0x3ee   : > { %v2365_v28 = vpop.eup %2364 }
 0x3ef   : > { %v1260_v29 = vmul.f32 %v2365_v28, %v2357_v14  ;;  %v799_v30 = vpop.permute.xlu0 %798  ;;  %v1777_v14 = vld [vmem:[%s3123_s13 + $0x18] sm:$0xff] }
 0x3f0   : > { %802 = vst.msk [vmem:[#allocation3 + $0x10] sm:$0xff] %vm778_vm2, %v799_v30  ;;  %v2252_v15 = vpack.c.bf16 %v1777_v14, %v1776_v12 }
 0x3f1   : > { %2165 = vmatmul.mubr.msk.f32.vlgmr.msra.gmra.mrb[10].mxu1 %vm778_vm2, %v1260_v29  ;;  %v1781_v29 = vld [vmem:[%s3123_s13 + $0x38] sm:$0xff] }
 0x3f2   : > { %2174 = vmatprep.mubr.msk.f32.mxu1 %vm2554_vm0, %v2555_v1  ;;  %v2367_v32 = vpop.eup %2366 }
 0x3f3   : > { %v915_v31 = vld [vmem:[#allocation3 + $0x18] sm:$0xff]  ;;  %v1262_v34 = vmul.f32 %v2367_v32, %v2359_v17  ;;  %v1778_v17 = vld [vmem:[%s3123_s13 + $0x20] sm:$0xff] }
 0x3f4   : > { %2173 = vmatpush3.msra.mxu1 %v915_v31  ;;  %v2044_v31 = vld [vmem:[%s3169_s14] ss:$0 sm:$0xff] }
 0x3f5   : > { %2242 = vmatprep.subr.bf16.mxu1 %v2553_v0 }
 0x3f6   : > { %v2369_v33 = vpop.eup %2368 }
 0x3f7   : > { %v1264_v35 = vmul.f32 %v2369_v33, %v2361_v19  ;;  %v914_v36 = vld [vmem:[#allocation3 + $0x10] sm:$0xff]  ;;  %v2255_v19 = vpack.c.bf16 %v1779_v18, %v1778_v17 }
 0x3f8   : > { %2168 = vmatpush3.msra.mxu0 %v914_v36  ;;  %v2046_v36 = vld [vmem:[%s3170_s1] ss:$0 sm:$0xff] }
 0x3f9   : > { %2170 = vmatmul.mubr.msk.f32.vlgmr.msra.gmra.mrb[6].mxu0 %vm778_vm2, %v1262_v34  ;;  %2175 = vmatmul.mubr.msk.f32.vlgmr.msra.gmra.mrb[12].mxu1 %vm778_vm2, %v1264_v35 }
 0x3fa   : > { %2236 = vmatprep.subr.bf16.mxu0 %v2553_v0  ;;  %2185 = vmatprep.mubr.msk.f32.mxu0 %vm2554_vm0, %v2555_v1 }
 0x3fb   : > { %2196 = vmatprep.mubr.msk.f32.mxu1 %vm2554_vm0, %v2555_v1  ;;  %2238 = vmatpush3.bf16.msra.mxu0 %v2237_v42 }
 0x3fc   : > { %2239 = vmatprep.subr.bf16.mxu0 %v2553_v0 }
 0x3ff   : > { %2241 = vmatpush3.bf16.msra.mxu0 %v2240_v44 }
 0x400   : > { %2248 = vmatprep.subr.bf16.mxu0 %v2553_v0 }
 0x45b   : > { %v1334_v37 = vpop.f32.mrb[4].mxu0 }
 0x45c   : > { %v2161_v38 = vpop.f32.mrb[5].mxu0 }
 0x4c4   : > { %v1407_v45 = vpop.f32.mrb[10].mxu1 }
 0x4c5   : > { %1558 = vrot.lane.b32.xlu1 %v1407_v45, %s2559_s21  ;;  %v2166_v46 = vpop.f32.mrb[11].mxu1  ;;  %s3168_s21 = sld [smem:[#allocation23_spill]] }
 0x4cb   : > { %v2043_v26 = vld [vmem:[%s3168_s21] ss:$0 sm:$0xff]  ;;  %s3171_s21 = sld [smem:[#allocation15_spill]] }
 0x4cc   : > { %v1480_v47 = vpop.f32.mrb[6].mxu0  ;;  %v1553_v48 = vpop.f32.mrb[12].mxu1 }
 0x4cd   : > { %1562 = vrot.lane.b32.xlu0 %v1480_v47, %s2560_s23  ;;  %v2171_v49 = vpop.f32.mrb[7].mxu0  ;;  %1566 = vrot.lane.b32.xlu1 %v1553_v48, %s2561_s18  ;;  %v2176_v50 = vpop.f32.mrb[13].mxu1  ;;  %s1895_s23 = scalar_lea.sflag [#allocation6], %s2838_s24  ;;  %s2460_s18 = scalar_lea.vmem %s3062_s27, 128 }
 0x4ce   : > { %p2461_p8 = scmp.ne.s32.totalorder %s3062_s27, %s2460_s18 }
 0x4d0   : > { %p2462_p1 = pnand %p2461_p8, %p3175_p12 }
 0x4d1   : > { %s2051_s14 = sshll.u32 %s3171_s21, 7  ;;  %s2464_s21 = sshll.u32 %s2562_s30, 4  ;;  %s2465_s21 = int_to_ptr.vmem [resolvable:$false] %s2464_s21 }
 0x4d2   : > { %s3060_s4 = scalar_lea.hbm %s3174_s3, %s2051_s14  ;;  %p2463_p10 = pneg %p2462_p1 }
 0x4d3   : > { %p2467_p3 = scmp.lt.s32.totalorder %s3062_s27, %s2465_s21 }
 0x537   : > { %v1559_v51 = vpop.permute.xlu1 %1558 }
 0x538   : > { %v1569_v52 = vsel %vm778_vm2, %v1334_v37, %v1559_v51  ;;  %v2048_v51 = vld [vmem:[%s3172_s9] ss:$0 sm:$0xff]  ;;  %s2466_s9 = scalar_lea.vmem %s2465_s21, 256 }
 0x539   : > { %p2468_p5 = scmp.lt.s32.totalorder %s2466_s9, %s2460_s18 }
 0x53b   : > { %p2469_p9 = por %p2468_p5, %p2467_p3 }
 0x53d   : > { %p2470_p11 = pnand %p2469_p9, %p2463_p10 }
 0x53f   : > { %v1563_v53 = vpop.permute.xlu0 %1562  ;;  %v1567_v54 = vpop.permute.xlu1 %1566 }
 0x540   : > { %v1571_v55 = vsel %vm1570_vm3, %v1569_v52, %v1563_v53  ;;  %v2049_v53 = vld [vmem:[%s3173_s20] ss:$0 sm:$0xff] }
 0x541   : > { %v1573_v56 = vsel %vm1572_vm4, %v1571_v55, %v1567_v54 }
 0x542   : > { %2186 = vmatmul.mubr.msk.f32.vlgmr.msra.gmra.mrb[8].mxu0 %vm623_vm1, %v1573_v56 }
 0x543   : > { %2215 = vmatprep.mubr.msk.f32.mxu0 %vm2554_vm0, %v2555_v1  ;;  %v1689_v1 = vld [vmem:[#allocation9] sm:$0xff] }
 0x544   : > { %v2243_v7 = vpack.c.bf16 %v1690_v6, %v1689_v1 }
 0x546   : > { %2244 = vmatpush3.bf16.msra.mxu1 %v2243_v7 }
 0x547   : > { %2245 = vmatprep.subr.bf16.mxu1 %v2553_v0 }
 0x54a   : > { %2247 = vmatpush3.bf16.msra.mxu1 %v2246_v10 }
 0x615   : > { %v1654_v58 = vpop.f32.mrb[8].mxu0 }
 0x616   : > { %v1655_v59 = vadd.f32 %v2040_v57, %v1654_v58  ;;  %v2187_v60 = vpop.f32.mrb[9].mxu0 }
 0x618   : > { %v1658_v61 = vadd.f32 %v1655_v59, %v2893_v16  ;;  %v1774_v16 = vld [vmem:[%s3123_s13] sm:$0xff] }
 0x619   : > { %v2249_v13 = vpack.c.bf16 %v1775_v11, %v1774_v16 }
 0x61a   : > { %v1661_v62 = vsel %vm623_vm1, %v1658_v61, 0.0 }
 0x61b   : > { %1662 = vadd.xlane.f32.xlu0 %v1661_v62  ;;  %2250 = vmatpush3.bf16.msra.mxu0 %v2249_v13 }
 0x61c   : > { %2251 = vmatprep.subr.bf16.mxu0 %v2553_v0 }
 0x61f   : > { %2253 = vmatpush3.bf16.msra.mxu0 %v2252_v15 }
 0x620   : > { %2254 = vmatprep.subr.bf16.mxu0 %v2553_v0 }
 0x623   : > { %2256 = vmatpush3.bf16.msra.mxu0 %v2255_v19 }
 0x624   : > { %2257 = vmatprep.subr.bf16.mxu0 %v2553_v0  ;;  %v1780_v0 = vld [vmem:[%s3123_s13 + $0x30] sm:$0xff] }
 0x625   : > { %v2258_v30 = vpack.c.bf16 %v1781_v29, %v1780_v0 }
 0x627   : > { %2259 = vmatpush3.bf16.msra.mxu0 %v2258_v30 }
 0x6a8   : > { %v1663_v63 = vpop.xlane.xlu0 %1662 }
 0x6a9   : > { %v1665_v2 = vmul.f32 0.03125, %v1663_v63 }
 0x6ab   : > { %v1666_v3 = vsub.f32 %v1658_v61, %v1665_v2 }
 0x6ad   : > { %v1667_v4 = vmul.f32 %v1666_v3, %v1666_v3 }
 0x6af   : > { %v1668_v5 = vsel %vm623_vm1, %v1667_v4, 0.0 }
 0x6b0   : > { %1669 = vadd.xlane.f32.xlu1 %v1668_v5 }
 0x73d   : > { %v1670_v20 = vpop.xlane.xlu1 %1669 }
 0x73e   : > { %v1671_v21 = vmul.f32 0.03125, %v1670_v20 }
 0x740   : > { %v1672_v22 = vadd.f32 1e-05, %v1671_v21 }
 0x742   : > { %2370 = vrsqrt.f32 %v1672_v22 }
 0x74c   : > { %v2371_v23 = vpop.eup %2370 }
 0x74d   : > { %v1674_v25 = vmul.f32 %v2371_v23, %v1666_v3 }
 0x74f   : > { %v1681_v27 = vmul.f32 %v2042_v24, %v1674_v25 }
 0x751   : > { %v1688_v28 = vadd.f32 %v2043_v26, %v1681_v27 }
 0x753   : > { %2197 = vmatmul.mubr.msk.f32.vlgmr.msra.gmra.mrb[14].mxu1 %vm623_vm1, %v1688_v28 }
 0x826   : > { %v1769_v32 = vpop.f32.mrb[14].mxu1 }
 0x827   : > { %v1770_v33 = vadd.f32 %v2044_v31, %v1769_v32  ;;  %v2198_v34 = vpop.f32.mrb[15].mxu1 }
 0x829   : > { %v1773_v35 = vmax.f32 %v1770_v33, 0.0 }
 0x82b   : > { %2216 = vmatmul.mubr.msk.f32.vlgmr.msra.gmra.mrb[10].mxu0 %vm1789_vm5, %v1773_v35 }
 0x8fe   : > { %v1859_v37 = vpop.f32.mrb[10].mxu0 }
 0x8ff   : > { %v1860_v38 = vadd.f32 %v2046_v36, %v1859_v37  ;;  %v2217_v39 = vpop.f32.mrb[11].mxu0 }
 0x901   : > { %v1863_v40 = vadd.f32 %v1860_v38, %v1688_v28 }
 0x903   : > { %v1866_v41 = vsel %vm623_vm1, %v1863_v40, 0.0 }
 0x904   : > { %1867 = vadd.xlane.f32.xlu0 %v1866_v41 }
 0x991   : > { %v1868_v42 = vpop.xlane.xlu0 %1867 }
 0x992   : > { %v1869_v43 = vmul.f32 0.03125, %v1868_v42 }
 0x994   : > { %v1870_v44 = vsub.f32 %v1863_v40, %v1869_v43 }
 0x996   : > { %v1871_v45 = vmul.f32 %v1870_v44, %v1870_v44 }
 0x998   : > { %v1872_v46 = vsel %vm623_vm1, %v1871_v45, 0.0 }
 0x999   : > { %1873 = vadd.xlane.f32.xlu0 %v1872_v46 }
 0xa26   : > { %v1874_v47 = vpop.xlane.xlu0 %1873 }
 0xa27   : > { %v1875_v48 = vmul.f32 0.03125, %v1874_v47 }
 0xa29   : > { %v1876_v49 = vadd.f32 1e-05, %v1875_v48 }
 0xa2b   : > { %2372 = vrsqrt.f32 %v1876_v49 }
 0xa35   : > { %v2373_v50 = vpop.eup %2372 }
 0xa36   : > { %v1878_v52 = vmul.f32 %v2373_v50, %v1870_v44 }
 0xa38   : > { %v1885_v54 = vmul.f32 %v2048_v51, %v1878_v52 }
 0xa3a   : > { %v1892_v55 = vadd.f32 %v2049_v53, %v1885_v54 }
 0xa3c   : > { %1893 = vst.msk [vmem:[%s606_s22] sm:$0xff] %vm623_vm1, %v1892_v55 }
 0xa3d   : > { %2473 = shalt.err (!%p2470_p11)
}
 0xa3e   : > { %s2474_s2 = scalar_lea.hbm %s3060_s4, 128  ;;  %s2478_s16 = scalar_lea.hbm %s3174_s3, 256 }
 0xa3f   : > { %p2475_p0 = scmp.ne.s32.totalorder %s3060_s4, %s2474_s2  ;;  %p2479_p6 = scmp.lt.u32.totalorder %s3060_s4, %s3174_s3 }
 0xa40   : > { %p2480_p7 = scmp.lt.u32.totalorder %s2478_s16, %s2474_s2  ;;  %p2482_p8 = scmp.lt.u32.totalorder %s2474_s2, %s3060_s4 }
 0xa41   : > { %p2476_p4 = pnand %p2475_p0, %p3175_p12 }
 0xa42   : > { %p2481_p2 = por %p2480_p7, %p2479_p6 }
 0xa43   : > { %p2477_p13 = pneg %p2476_p4 }
 0xa44   : > { %p2483_p1 = por %p2482_p8, %p2481_p2 }
 0xa46   : > { %p2484_p10 = pnand %p2483_p1, %p2477_p13 }
 0xa48   : > { %2487 = shalt.err (!%p2484_p10)
}
 0xa49   : > { %2270 = dma.vmem_to_hbm [thread:$0]  (%p3175_p12), %s3062_s27, 128, %s3060_s4, %s1895_s23  }
 0xa4a PF: > { %s3176_s22 = sld [smem:[#allocation14_spill]]  ;;  %s3177_s1 = sld [smem:[#allocation16_spill]] }
 0xa4b   : > { %p3179_p5 = scmp.ge.s32.totalorder %s2546_s29, 2 }
 0xa50   : > { %s1921_s18 = sand.u32 1, %s3176_s22   ;;  %p3178_p3 = scmp.ne.s32.totalorder %s3177_s1, 0 }
 0xa51   : > { %s1922_s30 = scalar_lea.sflag [#allocation6], %s1921_s18 }
 0xa52   : > { %p2284_p9 = pnand %p3179_p5, %p3178_p3 }
 0xa54   : > { %2521 = dma.done.wait (!%p2284_p9), %s1922_s30, 128  }
 0xa55   : > { %2523 = vsyncadd (!%p2284_p9), %s1922_s30, 4294967168  ;;  %s34_s29 = sadd.s32 1, %s2546_s29   ;;  %s3180_s24 = smov %s2530_s25 }
 0xa56   : > { %p31_p11 = scmp.ge.s32.totalorder %s34_s29, 4   ;;  %s3181_s25 = smov %s2534_s26 }
 0xa57   : > { %s3182_s26 = smov %s2795_s15  ;;  %s3183_s27 = smov %s2542_s28 }
 0xa58   : > { %s3184_s28 = smov %s3186_s12  ;;  %33 = sbr.rel (!%p31_p11) target bundleno = 20 (0x14), region = 152 }
 0xa5f   :  { %1927 = vsyncpa [#allocation5], 1 }
 0xa60   :  { %1929 = vsyncpa [#allocation5 + $0x1], 1 }
 0xa61   :  { %1930 = vsyncpa [#allocation8], 1 }
 0xa62   :  { %1931 = vsyncpa [#allocation6], 1 }
 0xa63   :  { %1933 = vsyncpa [#allocation6 + $0x1], 1 }

</bundles_post_ra>
